<compile_context>
chip_gen: v6e
topology: v6e:2x2x1
jax: 0.10.0
libtpu: 0.0.40
codegen_flags: <defaults>
</compile_context>

<pallas_src>
import numpy as np
import jax
import jax.numpy as jnp
from jax.experimental import pallas as pl
from jax.experimental.pallas import tpu as pltpu


def _round_up(x, m):
    return (x + m - 1) // m * m


# ----------------------------------------------------------------------------
# Pallas kernel
# ----------------------------------------------------------------------------
def _make_source_kernel(t_tile, sine_amp, noise_std):
    two_pi = float(2.0 * np.pi)

    def kernel(f0_ref, nproj_ref, rini_ref, mult_ref, w_ref, bias_ref,
               o_ref, carry_ref):
        t = pl.program_id(1)

        # -- start of each sequence: initial phase = rand_ini (harmonic 0 is 0)
        @pl.when(t == 0)
        def _init():
            carry_ref[...] = rini_ref[0]                   # (dim_pad, 1)

        # -- instantaneous normalized frequency per harmonic: frac(f0*k/sr) --
        f0 = f0_ref[0]                                     # (1, t_tile)
        rad = f0 * mult_ref[...]                           # (dim_pad, t_tile)
        rad = rad - jnp.floor(rad)                         # == (f0*k/sr) % 1

        # -- in-tile inclusive prefix sum over time: Hillis-Steele scan on the
        #    lane axis.  log2(t_tile) steps of roll (XLU) + masked add (VPU).
        lane = jax.lax.broadcasted_iota(jnp.int32, rad.shape, 1)
        csum = rad
        d = 1
        while d < t_tile:
            shifted = pltpu.roll(csum, d, 1)               # shifted[i] = csum[i-d]
            csum = csum + jnp.where(lane >= d, shifted, 0.0)
            d *= 2

        # -- add cross-tile phase carry, keep phase mod 1 (== cumsum_shift) --
        phase = carry_ref[...] + csum
        phase = phase - jnp.floor(phase)
        sines = jnp.sin(two_pi * phase)                    # EUP

        # -- fused Linear(dim -> 1) + noise + tanh on VPU/XLU/EUP.
        #    Noise was already projected through W in the wrapper, so only the
        #    sine path needs the per-harmonic weighted sum here.
        y = sine_amp * jnp.sum(w_ref[...] * sines, axis=0, keepdims=True)
        y = y + noise_std * nproj_ref[0].astype(jnp.float32) + bias_ref[...]
        o_ref[0] = jnp.tanh(y)                             # (1, t_tile), lane-dense

        # -- carry = phase of the last in-tile sample (already mod 1) --
        carry_ref[...] = phase[:, t_tile - 1:]

    return kernel


# ----------------------------------------------------------------------------
# Wrapper: SourceModuleHnNSF.forward
# ----------------------------------------------------------------------------
def source_module_hn_nsf_pallas(f0, params, cfg, rand_ini, noise, t_tile=None):
    """f0: (B, L, 1); rand_ini: (B, dim) with [:, 0] == 0; noise: (B, L, dim).
    Returns sine_merge (B, L, 1) == tanh(Linear(SineGen(f0)))."""
    B, L, _ = f0.shape
    dim = cfg["harmonic_num"] + 1
    dim_pad = max(8, _round_up(dim, 8))          # pad harmonics to sublane tile
    sr = float(cfg["sample_rate"])
    f32 = jnp.float32

    if t_tile is None:
        t_tile = min(1024, _round_up(L, 128))
    L_pad = _round_up(L, t_tile)
    n_t = L_pad // t_tile

    w = params["l_linear_w"].astype(f32).reshape(1, dim)        # (1, dim)

    # (B, 1, L_pad): F0, time on lanes.
    f0_t = jnp.pad(f0.astype(f32).reshape(B, L)[:, None, :],
                   ((0, 0), (0, 0), (0, L_pad - L)))
    # (B, 1, L_pad): Gaussian noise pre-projected through the Linear (bf16).
    nproj = (noise.astype(f32) @ w.T).reshape(B, L)
    nproj_t = jnp.pad(nproj[:, None, :],
                      ((0, 0), (0, 0), (0, L_pad - L))).astype(jnp.bfloat16)
    # (B, dim_pad, 1): random initial phases (padded rows inert).
    rini = jnp.pad(rand_ini.astype(f32), ((0, 0), (0, dim_pad - dim)))[:, :, None]
    # (dim_pad, 1): harmonic multiplier / sample_rate (padded rows -> rad = 0).
    mult = jnp.pad(jnp.arange(1, dim + 1, dtype=f32) / sr,
                   (0, dim_pad - dim))[:, None]
    # Linear(dim, 1) weight as a (dim_pad, 1) column (padded rows inert), bias.
    w_col = jnp.pad(w.reshape(dim), (0, dim_pad - dim))[:, None]
    bias = params["l_linear_b"].astype(f32).reshape(1, 1)

    kernel = _make_source_kernel(t_tile, float(cfg["sine_amp"]),
                                 float(cfg["noise_std"]))

    out = pl.pallas_call(
        kernel,
        out_shape=jax.ShapeDtypeStruct((B, 1, L_pad), f32),
        grid=(B, n_t),
        in_specs=[
            pl.BlockSpec((1, 1, t_tile), lambda b, t: (b, 0, t)),        # f0
            pl.BlockSpec((1, 1, t_tile), lambda b, t: (b, 0, t)),        # noise@W
            pl.BlockSpec((1, dim_pad, 1), lambda b, t: (b, 0, 0)),       # rand_ini
            pl.BlockSpec((dim_pad, 1), lambda b, t: (0, 0)),             # k / sr
            pl.BlockSpec((dim_pad, 1), lambda b, t: (0, 0)),             # W column
            pl.BlockSpec((1, 1), lambda b, t: (0, 0)),                   # bias
        ],
        out_specs=pl.BlockSpec((1, 1, t_tile), lambda b, t: (b, 0, t)),
        scratch_shapes=[
            pltpu.VMEM((dim_pad, 1), jnp.float32),       # per-core phase carry
        ],
        compiler_params=pltpu.CompilerParams(
            dimension_semantics=("parallel", "arbitrary")),
    )(f0_t, nproj_t, rini, mult, w_col, bias)

    return jnp.transpose(out[:, :, :L], (0, 2, 1))        # (B, L, 1)


# ----------------------------------------------------------------------------
# Pure-JAX literal port of the PyTorch module (for verification)
# ----------------------------------------------------------------------------
def source_module_hn_nsf_ref(f0, params, cfg, rand_ini, noise):
    dim = cfg["harmonic_num"] + 1
    sr = cfg["sample_rate"]
    mult = jnp.arange(1, dim + 1, dtype=jnp.float32)
    f0_buf = f0.astype(jnp.float32) * mult                        # (B, L, dim)

    rad_values = (f0_buf / sr) % 1.0
    rad_values = rad_values.at[:, 0, :].add(rand_ini)
    tmp_over_one = jnp.cumsum(rad_values, axis=1) % 1.0
    over_idx = (tmp_over_one[:, 1:, :] - tmp_over_one[:, :-1, :]) < 0.0
    cumsum_shift = jnp.concatenate(
        [jnp.zeros_like(rad_values[:, :1, :]),
         jnp.where(over_idx, -1.0, 0.0)], axis=1)
    sines = jnp.sin(jnp.cumsum(rad_values + cumsum_shift, axis=1) * 2.0 * np.pi)

    sine_waves = sines * cfg["sine_amp"] + cfg["noise_std"] * noise
    y = sine_waves @ params["l_linear_w"].T + params["l_linear_b"]
    return jnp.tanh(y)


# ----------------------------------------------------------------------------
if __name__ == "__main__":
    cfg = dict(sample_rate=16000, harmonic_num=8, sine_amp=0.1, noise_std=0.003)
    dim = cfg["harmonic_num"] + 1

    key = jax.random.PRNGKey(0)
    k_w, k_b, k_f0, k_v, k_ini, k_noise = jax.random.split(key, 6)
    params = {
        "l_linear_w": 0.1 * jax.random.normal(k_w, (1, dim), jnp.float32),
        "l_linear_b": 0.05 * jax.random.normal(k_b, (1,), jnp.float32),
    }

    # Small NSF-style F0 track: (B, L, 1), ~100-400 Hz, with some unvoiced (=0).
    B, L = 2, 600
    f0 = 100.0 + 300.0 * jax.random.uniform(k_f0, (B, L, 1), jnp.float32)
    f0 = f0 * (jax.random.uniform(k_v, (B, L, 1)) > 0.15)

    # RNG draws of the reference module (torch.rand / torch.randn equivalents),
    # shared by both paths so the outputs are directly comparable.
    rand_ini = jax.random.uniform(k_ini, (B, dim), jnp.float32).at[:, 0].set(0.0)
    noise = jax.random.normal(k_noise, (B, L, dim), jnp.float32)

    out = source_module_hn_nsf_pallas(f0, params, cfg, rand_ini, noise)
    out = jax.block_until_ready(out)
    assert out.shape == (B, L, 1), out.shape
    assert bool(jnp.all(jnp.isfinite(out)))

    ref = source_module_hn_nsf_ref(f0, params, cfg, rand_ini, noise)
    err = float(jnp.max(jnp.abs(out - ref)))
    assert err < 2e-3, f"max |pallas - ref| = {err}"
    print("KERNEL_OK")
</pallas_src>

<mosaic_0001>
module attributes {stable_mosaic.version = 11 : i64} {
  func.func @kernel(%arg0: i32, %arg1: i32, %arg2: memref<1x1x640xf32, #tpu.memory_space<vmem>>, %arg3: memref<1x1x640xbf16, #tpu.memory_space<vmem>>, %arg4: memref<1x16x1xf32, #tpu.memory_space<vmem>>, %arg5: memref<16x1xf32, #tpu.memory_space<vmem>>, %arg6: memref<16x1xf32, #tpu.memory_space<vmem>>, %arg7: memref<1x1xf32, #tpu.memory_space<vmem>>, %arg8: memref<1x1x640xf32, #tpu.memory_space<vmem>>, %arg9: memref<16x1xf32, #tpu.memory_space<vmem>>) attributes {dimension_semantics = [#tpu.dimension_semantics<parallel>, #tpu.dimension_semantics<arbitrary>], iteration_bounds = array<i64: 2, 1>, scalar_prefetch = 0 : i64, scratch_operands = 1 : i64, tpu.core_type = #tpu.core_type<tc>, window_params = [{transform_indices = @transform_0, window_bounds = array<i64: 1, 1, 640>}, {transform_indices = @transform_1, window_bounds = array<i64: 1, 1, 640>}, {transform_indices = @transform_2, window_bounds = array<i64: 1, 16, 1>}, {pipeline_mode = #tpu.pipeline_mode<synchronous>, transform_indices = @transform_3, window_bounds = array<i64: 16, 1>}, {pipeline_mode = #tpu.pipeline_mode<synchronous>, transform_indices = @transform_4, window_bounds = array<i64: 16, 1>}, {pipeline_mode = #tpu.pipeline_mode<synchronous>, transform_indices = @transform_5, window_bounds = array<i64: 1, 1>}, {transform_indices = @transform_6, window_bounds = array<i64: 1, 1, 640>}]} {
    %c0_i32 = arith.constant 0 : i32
    %0 = arith.cmpi eq, %arg1, %c0_i32 : i32
    %1 = arith.extui %0 : i1 to i32
    %c0_i32_0 = arith.constant 0 : i32
    %2 = arith.cmpi ne, %1, %c0_i32_0 : i32
    scf.if %2 {
      %c0_42 = arith.constant 0 : index
      %c0_43 = arith.constant 0 : index
      %c0_44 = arith.constant 0 : index
      %102 = vector.load %arg4[%c0_42, %c0_43, %c0_44] : memref<1x16x1xf32, #tpu.memory_space<vmem>>, vector<1x16x1xf32>
      %103 = vector.shape_cast %102 : vector<1x16x1xf32> to vector<16x1xf32>
      %c0_45 = arith.constant 0 : index
      %c0_46 = arith.constant 0 : index
      %104 = vector.load %arg9[%c0_45, %c0_46] : memref<16x1xf32, #tpu.memory_space<vmem>>, vector<16x1xf32>
      tpu.vector_store %arg9[%c0_45, %c0_46], %103 {strides = array<i32>} : memref<16x1xf32, #tpu.memory_space<vmem>>, vector<16x1xf32>,
    } else {
    }
    %c0 = arith.constant 0 : index
    %c0_1 = arith.constant 0 : index
    %c0_2 = arith.constant 0 : index
    %3 = vector.load %arg2[%c0, %c0_1, %c0_2] : memref<1x1x640xf32, #tpu.memory_space<vmem>>, vector<1x1x640xf32>
    %4 = vector.shape_cast %3 : vector<1x1x640xf32> to vector<1x640xf32>
    %c0_3 = arith.constant 0 : index
    %c0_4 = arith.constant 0 : index
    %5 = vector.load %arg5[%c0_3, %c0_4] : memref<16x1xf32, #tpu.memory_space<vmem>>, vector<16x1xf32>
    %6 = vector.broadcast %4 : vector<1x640xf32> to vector<16x640xf32>
    %7 = vector.broadcast %5 : vector<16x1xf32> to vector<16x640xf32>
    %8 = arith.mulf %6, %7 : vector<16x640xf32>
    %9 = math.floor %8 : vector<16x640xf32>
    %10 = arith.subf %8, %9 : vector<16x640xf32>
    %11 = tpu.iota {dimensions = array<i32: 1>} : vector<16x640xi32>
    %c1_i32 = arith.constant 1 : i32
    %12 = tpu.dynamic_rotate %10 by %c1_i32 dim 1 : vector<16x640xf32>, i32 -> vector<16x640xf32>
    %c1_i32_5 = arith.constant 1 : i32
    %13 = vector.broadcast %c1_i32_5 : i32 to vector<16x640xi32>
    %14 = arith.cmpi sge, %11, %13 : vector<16x640xi32>
    %cst = arith.constant 0.000000e+00 : f32
    %15 = vector.broadcast %cst : f32 to vector<16x640xf32>
    %16 = arith.select %14, %12, %15 : vector<16x640xi1>, vector<16x640xf32>
    %17 = arith.addf %10, %16 : vector<16x640xf32>
    %c2_i32 = arith.constant 2 : i32
    %18 = tpu.dynamic_rotate %17 by %c2_i32 dim 1 : vector<16x640xf32>, i32 -> vector<16x640xf32>
    %c2_i32_6 = arith.constant 2 : i32
    %19 = vector.broadcast %c2_i32_6 : i32 to vector<16x640xi32>
    %20 = arith.cmpi sge, %11, %19 : vector<16x640xi32>
    %cst_7 = arith.constant 0.000000e+00 : f32
    %21 = vector.broadcast %cst_7 : f32 to vector<16x640xf32>
    %22 = arith.select %20, %18, %21 : vector<16x640xi1>, vector<16x640xf32>
    %23 = arith.addf %17, %22 : vector<16x640xf32>
    %c4_i32 = arith.constant 4 : i32
    %24 = tpu.dynamic_rotate %23 by %c4_i32 dim 1 : vector<16x640xf32>, i32 -> vector<16x640xf32>
    %c4_i32_8 = arith.constant 4 : i32
    %25 = vector.broadcast %c4_i32_8 : i32 to vector<16x640xi32>
    %26 = arith.cmpi sge, %11, %25 : vector<16x640xi32>
    %cst_9 = arith.constant 0.000000e+00 : f32
    %27 = vector.broadcast %cst_9 : f32 to vector<16x640xf32>
    %28 = arith.select %26, %24, %27 : vector<16x640xi1>, vector<16x640xf32>
    %29 = arith.addf %23, %28 : vector<16x640xf32>
    %c8_i32 = arith.constant 8 : i32
    %30 = tpu.dynamic_rotate %29 by %c8_i32 dim 1 : vector<16x640xf32>, i32 -> vector<16x640xf32>
    %c8_i32_10 = arith.constant 8 : i32
    %31 = vector.broadcast %c8_i32_10 : i32 to vector<16x640xi32>
    %32 = arith.cmpi sge, %11, %31 : vector<16x640xi32>
    %cst_11 = arith.constant 0.000000e+00 : f32
    %33 = vector.broadcast %cst_11 : f32 to vector<16x640xf32>
    %34 = arith.select %32, %30, %33 : vector<16x640xi1>, vector<16x640xf32>
    %35 = arith.addf %29, %34 : vector<16x640xf32>
    %c16_i32 = arith.constant 16 : i32
    %36 = tpu.dynamic_rotate %35 by %c16_i32 dim 1 : vector<16x640xf32>, i32 -> vector<16x640xf32>
    %c16_i32_12 = arith.constant 16 : i32
    %37 = vector.broadcast %c16_i32_12 : i32 to vector<16x640xi32>
    %38 = arith.cmpi sge, %11, %37 : vector<16x640xi32>
    %cst_13 = arith.constant 0.000000e+00 : f32
    %39 = vector.broadcast %cst_13 : f32 to vector<16x640xf32>
    %40 = arith.select %38, %36, %39 : vector<16x640xi1>, vector<16x640xf32>
    %41 = arith.addf %35, %40 : vector<16x640xf32>
    %c32_i32 = arith.constant 32 : i32
    %42 = tpu.dynamic_rotate %41 by %c32_i32 dim 1 : vector<16x640xf32>, i32 -> vector<16x640xf32>
    %c32_i32_14 = arith.constant 32 : i32
    %43 = vector.broadcast %c32_i32_14 : i32 to vector<16x640xi32>
    %44 = arith.cmpi sge, %11, %43 : vector<16x640xi32>
    %cst_15 = arith.constant 0.000000e+00 : f32
    %45 = vector.broadcast %cst_15 : f32 to vector<16x640xf32>
    %46 = arith.select %44, %42, %45 : vector<16x640xi1>, vector<16x640xf32>
    %47 = arith.addf %41, %46 : vector<16x640xf32>
    %c64_i32 = arith.constant 64 : i32
    %48 = tpu.dynamic_rotate %47 by %c64_i32 dim 1 : vector<16x640xf32>, i32 -> vector<16x640xf32>
    %c64_i32_16 = arith.constant 64 : i32
    %49 = vector.broadcast %c64_i32_16 : i32 to vector<16x640xi32>
    %50 = arith.cmpi sge, %11, %49 : vector<16x640xi32>
    %cst_17 = arith.constant 0.000000e+00 : f32
    %51 = vector.broadcast %cst_17 : f32 to vector<16x640xf32>
    %52 = arith.select %50, %48, %51 : vector<16x640xi1>, vector<16x640xf32>
    %53 = arith.addf %47, %52 : vector<16x640xf32>
    %c128_i32 = arith.constant 128 : i32
    %54 = tpu.dynamic_rotate %53 by %c128_i32 dim 1 : vector<16x640xf32>, i32 -> vector<16x640xf32>
    %c128_i32_18 = arith.constant 128 : i32
    %55 = vector.broadcast %c128_i32_18 : i32 to vector<16x640xi32>
    %56 = arith.cmpi sge, %11, %55 : vector<16x640xi32>
    %cst_19 = arith.constant 0.000000e+00 : f32
    %57 = vector.broadcast %cst_19 : f32 to vector<16x640xf32>
    %58 = arith.select %56, %54, %57 : vector<16x640xi1>, vector<16x640xf32>
    %59 = arith.addf %53, %58 : vector<16x640xf32>
    %c256_i32 = arith.constant 256 : i32
    %60 = tpu.dynamic_rotate %59 by %c256_i32 dim 1 : vector<16x640xf32>, i32 -> vector<16x640xf32>
    %c256_i32_20 = arith.constant 256 : i32
    %61 = vector.broadcast %c256_i32_20 : i32 to vector<16x640xi32>
    %62 = arith.cmpi sge, %11, %61 : vector<16x640xi32>
    %cst_21 = arith.constant 0.000000e+00 : f32
    %63 = vector.broadcast %cst_21 : f32 to vector<16x640xf32>
    %64 = arith.select %62, %60, %63 : vector<16x640xi1>, vector<16x640xf32>
    %65 = arith.addf %59, %64 : vector<16x640xf32>
    %c512_i32 = arith.constant 512 : i32
    %66 = tpu.dynamic_rotate %65 by %c512_i32 dim 1 : vector<16x640xf32>, i32 -> vector<16x640xf32>
    %c512_i32_22 = arith.constant 512 : i32
    %67 = vector.broadcast %c512_i32_22 : i32 to vector<16x640xi32>
    %68 = arith.cmpi sge, %11, %67 : vector<16x640xi32>
    %cst_23 = arith.constant 0.000000e+00 : f32
    %69 = vector.broadcast %cst_23 : f32 to vector<16x640xf32>
    %70 = arith.select %68, %66, %69 : vector<16x640xi1>, vector<16x640xf32>
    %71 = arith.addf %65, %70 : vector<16x640xf32>
    %c0_24 = arith.constant 0 : index
    %c0_25 = arith.constant 0 : index
    %72 = vector.load %arg9[%c0_24, %c0_25] : memref<16x1xf32, #tpu.memory_space<vmem>>, vector<16x1xf32>
    %73 = vector.broadcast %72 : vector<16x1xf32> to vector<16x640xf32>
    %74 = arith.addf %73, %71 : vector<16x640xf32>
    %75 = math.floor %74 : vector<16x640xf32>
    %76 = arith.subf %74, %75 : vector<16x640xf32>
    %cst_26 = arith.constant 6.28318548 : f32
    %77 = vector.broadcast %cst_26 : f32 to vector<16x640xf32>
    %78 = arith.mulf %77, %76 : vector<16x640xf32>
    %79 = math.sin %78 : vector<16x640xf32>
    %c0_27 = arith.constant 0 : index
    %c0_28 = arith.constant 0 : index
    %80 = vector.load %arg6[%c0_27, %c0_28] : memref<16x1xf32, #tpu.memory_space<vmem>>, vector<16x1xf32>
    %81 = vector.broadcast %80 : vector<16x1xf32> to vector<16x640xf32>
    %82 = arith.mulf %81, %79 : vector<16x640xf32>
    %cst_29 = arith.constant dense<0.000000e+00> : vector<640xf32>
    %83 = vector.multi_reduction <add>, %82, %cst_29 [0] : vector<16x640xf32> to vector<640xf32>
    %84 = vector.shape_cast %83 : vector<640xf32> to vector<1x640xf32>
    %cst_30 = arith.constant 1.000000e-01 : f32
    %85 = vector.broadcast %cst_30 : f32 to vector<1x640xf32>
    %86 = arith.mulf %85, %84 : vector<1x640xf32>
    %c0_31 = arith.constant 0 : index
    %c0_32 = arith.constant 0 : index
    %c0_33 = arith.constant 0 : index
    %87 = vector.load %arg3[%c0_31, %c0_32, %c0_33] : memref<1x1x640xbf16, #tpu.memory_space<vmem>>, vector<1x1x640xbf16>
    %88 = vector.shape_cast %87 : vector<1x1x640xbf16> to vector<1x640xbf16>
    %89 = arith.extf %88 : vector<1x640xbf16> to vector<1x640xf32>
    %cst_34 = arith.constant 3.000000e-03 : f32
    %90 = vector.broadcast %cst_34 : f32 to vector<1x640xf32>
    %91 = arith.mulf %90, %89 : vector<1x640xf32>
    %92 = arith.addf %86, %91 : vector<1x640xf32>
    %c0_35 = arith.constant 0 : index
    %c0_36 = arith.constant 0 : index
    %93 = vector.load %arg7[%c0_35, %c0_36] : memref<1x1xf32, #tpu.memory_space<vmem>>, vector<1x1xf32>
    %94 = vector.broadcast %93 : vector<1x1xf32> to vector<1x640xf32>
    %95 = arith.addf %92, %94 : vector<1x640xf32>
    %96 = math.tanh %95 : vector<1x640xf32>
    %c0_37 = arith.constant 0 : index
    %c0_38 = arith.constant 0 : index
    %c0_39 = arith.constant 0 : index
    %97 = vector.load %arg8[%c0_37, %c0_38, %c0_39] : memref<1x1x640xf32, #tpu.memory_space<vmem>>, vector<1x1x640xf32>
    %98 = vector.shape_cast %97 : vector<1x1x640xf32> to vector<1x640xf32>
    %99 = vector.shape_cast %96 : vector<1x640xf32> to vector<1x1x640xf32>
    tpu.vector_store %arg8[%c0_37, %c0_38, %c0_39], %99 {strides = array<i32>} : memref<1x1x640xf32, #tpu.memory_space<vmem>>, vector<1x1x640xf32>,
    %100 = vector.extract_strided_slice %76 {offsets = [0, 639], sizes = [16, 1], strides = [1, 1]} : vector<16x640xf32> to vector<16x1xf32>
    %c0_40 = arith.constant 0 : index
    %c0_41 = arith.constant 0 : index
    %101 = vector.load %arg9[%c0_40, %c0_41] : memref<16x1xf32, #tpu.memory_space<vmem>>, vector<16x1xf32>
    tpu.vector_store %arg9[%c0_40, %c0_41], %100 {strides = array<i32>} : memref<16x1xf32, #tpu.memory_space<vmem>>, vector<16x1xf32>,
    return
  }
  func.func @transform_0(%arg0: i32, %arg1: i32) -> (i32, i32, i32) {
    %c0_i32 = arith.constant 0 : i32
    %c0_i32_0 = arith.constant 0 : i32
    return %arg0, %c0_i32, %arg1 : i32, i32, i32
  }
  func.func @transform_1(%arg0: i32, %arg1: i32) -> (i32, i32, i32) {
    %c0_i32 = arith.constant 0 : i32
    %c0_i32_0 = arith.constant 0 : i32
    return %arg0, %c0_i32, %arg1 : i32, i32, i32
  }
  func.func @transform_2(%arg0: i32, %arg1: i32) -> (i32, i32, i32) {
    %c0_i32 = arith.constant 0 : i32
    %c0_i32_0 = arith.constant 0 : i32
    %c0_i32_1 = arith.constant 0 : i32
    return %arg0, %c0_i32, %c0_i32_0 : i32, i32, i32
  }
  func.func @transform_3(%arg0: i32, %arg1: i32) -> (i32, i32) {
    %c0_i32 = arith.constant 0 : i32
    %c0_i32_0 = arith.constant 0 : i32
    %c0_i32_1 = arith.constant 0 : i32
    return %c0_i32, %c0_i32_0 : i32, i32
  }
  func.func @transform_4(%arg0: i32, %arg1: i32) -> (i32, i32) {
    %c0_i32 = arith.constant 0 : i32
    %c0_i32_0 = arith.constant 0 : i32
    %c0_i32_1 = arith.constant 0 : i32
    return %c0_i32, %c0_i32_0 : i32, i32
  }
  func.func @transform_5(%arg0: i32, %arg1: i32) -> (i32, i32) {
    %c0_i32 = arith.constant 0 : i32
    %c0_i32_0 = arith.constant 0 : i32
    %c0_i32_1 = arith.constant 0 : i32
    return %c0_i32, %c0_i32_0 : i32, i32
  }
  func.func @transform_6(%arg0: i32, %arg1: i32) -> (i32, i32, i32) {
    %c0_i32 = arith.constant 0 : i32
    %c0_i32_0 = arith.constant 0 : i32
    return %arg0, %c0_i32, %arg1 : i32, i32, i32
  }
}

</mosaic_0001>

<bundles_post_ra>
// kernel: tpu_custom_call.1
= control target key start
LH: loop header
LB: loop body
LE: loop exit
PB: predicated region body
PF: predicated region fallthrough
CT: control target
= control target key end

     0   :  { %s4127_s0 = inlined_call_operand.vmem [shape: f32[2,1,640], index: 0, kind: input, shape index: {}]   ;;  %s4128_s1 = inlined_call_operand.vmem [shape: bf16[2,1,640], index: 1, kind: input, shape index: {}]   ;;  %s4129_s2 = inlined_call_operand.vmem [shape: f32[2,16,1], index: 2, kind: input, shape index: {}]   ;;  %s4130_s3 = inlined_call_operand.vmem [shape: f32[16,1], index: 3, kind: input, shape index: {}]   ;;  %s4131_s4 = inlined_call_operand.vmem [shape: f32[16,1], index: 4, kind: input, shape index: {}]   ;;  %s4132_s5 = inlined_call_operand.<no memory space> [shape: f32[1,1], index: 5, kind: input, shape index: {}]   ;;  %s4133_s6 = inlined_call_operand.hbm [shape: f32[2,1,640], index: 6, kind: output, shape index: {}]  }
   0x1   :  { %v11_v0 = vstv %s4132_s5 }
   0x2   :  { %12 = vst [vmem:[#allocation3] sm:$0x1] %v11_v0 }
   0x3   :  { %13 = vsyncpa [#allocation5], 0 }
   0x4   :  { %15 = vsyncpa [#allocation5 + $0x1], 0  ;;  %s2622_s23 = smov 0   ;;  %s2624_s24 = smov 0  }
   0x5   :  { %s2626_s25 = smov 0   ;;  %s2628_s26 = smov 0  }
   0x6   :  { %s2630_s27 = smov 0   ;;  %s2632_s28 = smov 0  }
   0x7 LB: > { %s2273_s5 = sadd.s32 4294967295, %s2566_s28   ;;  %s2274_s29 = sadd.s32 4294967294, %s2566_s28   ;;  %s2566_s28 = sphi %s2632_s28, %s21_s28   ;;  %s2562_s27 = sphi %s2630_s27, %s4228_s27   ;;  %s2558_s26 = sphi %s2628_s26, %s4227_s26   ;;  %s2554_s25 = sphi %s2626_s25, %s4226_s25   ;;  %s2550_s24 = sphi %s2624_s24, %s4225_s24   ;;  %s2546_s23 = sphi %s2622_s23, %s4224_s23  }
   0x8   : > { %s33_s30 = sadd.s32 1, %s2562_s27  ;;  %s187_s7 = sadd.s32 1, %s2554_s25 }
   0x9   : > { %p35_p0 = scmp.ge.s32.totalorder %s33_s30, 2  ;;  %p197_p1 = scmp.ne.s32.totalorder %s2554_s25, %s2550_s24 }
   0xa   : > { %p198_p2 = scmp.eq.s32.totalorder %s2273_s5, 1  ;;  %p203_p3 = scmp.ne.s32.totalorder %s2550_s24, %s2546_s23 }
   0xb   : > { %s4230_s30 = smov (%p35_p0, %s33_s30), 0  ;;  %p204_p5 = scmp.eq.s32.totalorder %s2274_s29, 1 }
   0xc   : > { %p2662_p4 = por %p198_p2, %p197_p1  ;;  %s182_s9 = ssub.s32 %s2562_s27, %s4230_s30 }
   0xd   : > { %p2277_p6 = scmp.ge.s32.totalorder %s2566_s28, 1  ;;  %p185_p7 = scmp.eq.s32.totalorder %s182_s9, 0 }
   0xe   : > { %p2669_p8 = por %p204_p5, %p203_p3  ;;  %p263_p9 = scmp.lt.s32.totalorder %s2566_s28, 3 }
   0xf   : > { %s2675_s11 = scalar_select %p185_p7, %s2554_s25, %s187_s7  }
  0x10   : > { %p264_p10 = pnand %p2277_p6, %p263_p9 }
  0x12   : > { %267 = sbr.rel (%p264_p10) target bundleno = 1418 (0x58a), region = 44 }
  0x17   : > { %v343_v1 = vld [vmem:[%s4130_s3] sm:$0xff]  ;;  %p310_p11 = scmp.lt.s32.totalorder %s2558_s26, 1  ;;  %v2568_v2 = vmov 0   ;;  %v4134_v3 = vlaneseq  ;;  %v344_v4 = vld [vmem:[%s4130_s3 + $0x8] sm:$0xff]  ;;  %vm339_vm0 = vcmask 7168   ;;  %s2569_s13 = smov 1  }
  0x18   : > { %2437 = vset.pattern.permute.xlu0 %v2568_v2  ;;  %2438 = vset.pattern.permute.xlu1 %v2568_v2  ;;  %s2571_s15 = smov 4   ;;  %s2572_s16 = smov 8  }
  0x19   : > { %373 = vperm.xlu0 %2437, %v343_v1   ;;  %s311_s14 = scalar_select %p310_p11, %s2558_s26, 1  ;;  %v2694_v7 = vshrl.u32 %v4134_v3, 7  ;;  %v2735_v56 = vand.u32 127, %v4134_v3 }
  0x1a   : > { %s2575_s19 = smov 64   ;;  %s306_s7 = sand.u32 1, %s2550_s24  }
  0x1b   : > { %s2325_s17 = smul.u32 5, %s311_s14  ;;  %s2323_s18 = sshll.u32 %s311_s14, 4  ;;  %4169 = vst [vmem:[#allocation7_spill] sm:$0xff] %v2694_v7  ;;  %v364_v10 = vsub.s32 4, %v2694_v7  ;;  %v356_v12 = vsub.s32 2, %v2694_v7  ;;  %v2713_v15 = vsub.s32 0, %v2694_v7 }
  0x1c   : > { %s331_s21 = scalar_lea.vmem %s4129_s2, %s2323_s18  ;;  %v360_v16 = vsub.s32 3, %v2694_v7  ;;  %v352_v23 = vsub.s32 1, %v2694_v7  ;;  %vm437_vm1 = vcmp.lt.s32.totalorder %v2735_v56, 1  ;;  %s2570_s14 = smov 2   ;;  %vm448_vm2 = vcmp.ge.s32.totalorder %v2735_v56, 1 }
  0x1d   : > { %378 = vperm.xlu0 %2437, %v344_v4   ;;  %s2691_s29 = scalar_lea.vmem %s4128_s1, %s2325_s17  ;;  %v337_v5 = vld [vmem:[%s331_s21] sm:$0xff]  ;;  %v338_v6 = vld [vmem:[%s331_s21 + $0x8] sm:$0xff]  ;;  %s316_s12 = scalar_lea.vmem %s4127_s0, %s2325_s17  ;;  %4173 = vst [vmem:[#allocation11_spill] sm:$0xff] %v2713_v15  ;;  %vm493_vm3 = vcmp.lt.s32.totalorder %v2735_v56, 2  ;;  %vm504_vm4 = vcmp.ge.s32.totalorder %v2735_v56, 2  ;;  %vm549_vm5 = vcmp.lt.s32.totalorder %v2735_v56, 4 }
  0x1e   : > { %340 = vst.msk [vmem:[#allocation2] sm:$0xff] %vm339_vm0, %v337_v5  ;;  %341 = vst.msk [vmem:[#allocation2 + $0x8] sm:$0xff] %vm339_vm0, %v338_v6  ;;  %v2038_v8 = vld [vmem:[%s2691_s29] sm:$0x1f]  ;;  %vm560_vm6 = vcmp.ge.s32.totalorder %v2735_v56, 4  ;;  %vm605_vm7 = vcmp.lt.s32.totalorder %v2735_v56, 8 }
  0x1f   : > { %v2039_v9 = vunpack.c.l.bf16 %v2038_v8  ;;  %v342_v17 = vld [vmem:[%s316_s12] sm:$0x1f]  ;;  %s2573_s17 = smov 16   ;;  %vm616_vm8 = vcmp.ge.s32.totalorder %v2735_v56, 8  ;;  %vm661_vm9 = vcmp.lt.s32.totalorder %v2735_v56, 16  ;;  %s2574_s18 = smov 32  }
  0x20   : > { %v365_v18 = vrot.slane %v342_v17, %v364_v10  ;;  %v349_v19 = vrot.slane %v342_v17, %v2713_v15  ;;  %v361_v20 = vrot.slane %v342_v17, %v360_v16  ;;  %v357_v22 = vrot.slane %v342_v17, %v356_v12  ;;  %s2366_s9 = smul.u32 80, %s2558_s26 }
  0x21   : > { %v2700_v11 = vmul.f32 0.003, %v2039_v9  ;;  %v353_v31 = vrot.slane %v342_v17, %v352_v23  ;;  %vm672_vm10 = vcmp.ge.s32.totalorder %v2735_v56, 16  ;;  %vm717_vm11 = vcmp.lt.s32.totalorder %v2735_v56, 32 }
  0x22   : > { %vm728_vm12 = vcmp.ge.s32.totalorder %v2735_v56, 32  ;;  %vm773_vm13 = vcmp.lt.s32.totalorder %v2735_v56, 64  ;;  %vm784_vm14 = vcmp.ge.s32.totalorder %v2735_v56, 64 }
  0x23   : > { %4170 = vst [vmem:[#allocation8_spill] sm:$0xff] %v2700_v11  ;;  %v2704_v13 = vrot.slane %v2700_v11, %v364_v10  ;;  %v2707_v14 = vrot.slane %v2700_v11, %v356_v12 }
  0x25   : > { %4171 = vst [vmem:[#allocation9_spill] sm:$0xff] %v2704_v13  ;;  %4172 = vst [vmem:[#allocation10_spill] sm:$0xff] %v2707_v14 }
  0x94   : > { %v374_v21 = vpop.permute.xlu0 %373 }
  0x95   : > { %v385_v24 = vmul.f32 %v374_v21, %v365_v18  ;;  %v381_v25 = vmul.f32 %v374_v21, %v349_v19  ;;  %v384_v26 = vmul.f32 %v374_v21, %v361_v20  ;;  %v383_v30 = vmul.f32 %v374_v21, %v357_v22 }
  0x96   : > { %v382_v39 = vmul.f32 %v374_v21, %v353_v31 }
  0x97   : > { %v395_v27 = vfloor.f32 %v385_v24  ;;  %v391_v28 = vfloor.f32 %v381_v25  ;;  %v394_v34 = vfloor.f32 %v384_v26  ;;  %v393_v38 = vfloor.f32 %v383_v30 }
  0x98   : > { %v379_v29 = vpop.permute.xlu0 %378  ;;  %v392_v44 = vfloor.f32 %v382_v39 }
  0x99   : > { %v405_v32 = vsub.f32 %v385_v24, %v395_v27  ;;  %v2718_v33 = vsub.f32 %v381_v25, %v391_v28  ;;  %v386_v35 = vmul.f32 %v379_v29, %v349_v19  ;;  %v390_v36 = vmul.f32 %v379_v29, %v365_v18 }
  0x9a   : > { %v404_v40 = vsub.f32 %v384_v26, %v394_v34  ;;  %v389_v43 = vmul.f32 %v379_v29, %v361_v20  ;;  %v403_v45 = vsub.f32 %v383_v30, %v393_v38  ;;  %v388_v48 = vmul.f32 %v379_v29, %v357_v22 }
  0x9b   : > { %433 = vrot.lane.b32.xlu0 %v405_v32, %s2569_s13  ;;  %417 = vrot.lane.b32.xlu1 %v2718_v33, %s2569_s13  ;;  %v396_v37 = vfloor.f32 %v386_v35  ;;  %v400_v42 = vfloor.f32 %v390_v36  ;;  %v402_v49 = vsub.f32 %v382_v39, %v392_v44  ;;  %v387_v52 = vmul.f32 %v379_v29, %v353_v31 }
  0x9c   : > { %v399_v47 = vfloor.f32 %v389_v43  ;;  %v398_v51 = vfloor.f32 %v388_v48 }
  0x9d   : > { %v2723_v41 = vsub.f32 %v386_v35, %v396_v37  ;;  %v410_v46 = vsub.f32 %v390_v36, %v400_v42  ;;  %v397_v54 = vfloor.f32 %v387_v52 }
  0x9e   : > { %v409_v50 = vsub.f32 %v389_v43, %v399_v47  ;;  %v408_v53 = vsub.f32 %v388_v48, %v398_v51 }
  0x9f   : > { %429 = vrot.lane.b32.xlu0 %v404_v40, %s2569_s13  ;;  %419 = vrot.lane.b32.xlu1 %v2723_v41, %s2569_s13  ;;  %v407_v55 = vsub.f32 %v387_v52, %v397_v54 }
  0xa3   : > { %425 = vrot.lane.b32.xlu0 %v403_v45, %s2569_s13  ;;  %435 = vrot.lane.b32.xlu1 %v410_v46, %s2569_s13 }
  0xa7   : > { %421 = vrot.lane.b32.xlu0 %v402_v49, %s2569_s13  ;;  %431 = vrot.lane.b32.xlu1 %v409_v50, %s2569_s13 }
  0xab   : > { %427 = vrot.lane.b32.xlu1 %v408_v53, %s2569_s13 }
  0xaf   : > { %423 = vrot.lane.b32.xlu1 %v407_v55, %s2569_s13 }
 0x10d   : > { %v434_v57 = vpop.permute.xlu0 %433  ;;  %v418_v58 = vpop.permute.xlu1 %417 }
 0x10e   : > { %v446_v4 = vsel %vm437_vm1, %v434_v57, %v418_v58 }
 0x10f   : > { %v453_v16 = vsel %vm448_vm2, %v446_v4, 0.0 }
 0x110   : > { %v463_v19 = vadd.f32 %v453_v16, %v2718_v33 }
 0x111   : > { %v430_v59 = vpop.permute.xlu0 %429  ;;  %v420_v60 = vpop.permute.xlu1 %419 }
 0x112   : > { %v438_v61 = vsel %vm437_vm1, %v430_v59, %v434_v57 }
 0x113   : > { %v467_v62 = vadd.f32 %v438_v61, %v405_v32 }
 0x115   : > { %v426_v63 = vpop.permute.xlu0 %425  ;;  %489 = vrot.lane.b32.xlu0 %v467_v62, %s2570_s14  ;;  %v436_v0 = vpop.permute.xlu1 %435 }
 0x116   : > { %v440_v1 = vsel %vm437_vm1, %v426_v63, %v430_v59  ;;  %v447_v22 = vsel %vm437_vm1, %v436_v0, %v420_v60 }
 0x117   : > { %v466_v2 = vadd.f32 %v440_v1, %v404_v40  ;;  %v458_v27 = vsel %vm448_vm2, %v447_v22, 0.0 }
 0x118   : > { %v468_v28 = vadd.f32 %v458_v27, %v2723_v41 }
 0x119   : > { %485 = vrot.lane.b32.xlu0 %v466_v2, %s2570_s14  ;;  %v422_v5 = vpop.permute.xlu0 %421  ;;  %v432_v6 = vpop.permute.xlu1 %431 }
 0x11a   : > { %v442_v8 = vsel %vm437_vm1, %v422_v5, %v426_v63  ;;  %v439_v9 = vsel %vm437_vm1, %v432_v6, %v436_v0  ;;  %v444_v21 = vsel %vm437_vm1, %v418_v58, %v422_v5 }
 0x11b   : > { %v465_v10 = vadd.f32 %v442_v8, %v403_v45  ;;  %v472_v12 = vadd.f32 %v439_v9, %v410_v46  ;;  %v464_v25 = vadd.f32 %v444_v21, %v402_v49 }
 0x11d   : > { %481 = vrot.lane.b32.xlu0 %v465_v10, %s2570_s14  ;;  %491 = vrot.lane.b32.xlu1 %v472_v12, %s2570_s14  ;;  %v428_v17 = vpop.permute.xlu1 %427 }
 0x11e   : > { %v441_v18 = vsel %vm437_vm1, %v428_v17, %v432_v6 }
 0x11f   : > { %v471_v20 = vadd.f32 %v441_v18, %v409_v50 }
 0x121   : > { %473 = vrot.lane.b32.xlu0 %v463_v19, %s2570_s14  ;;  %487 = vrot.lane.b32.xlu1 %v471_v20, %s2570_s14  ;;  %v424_v23 = vpop.permute.xlu1 %423 }
 0x122   : > { %v443_v24 = vsel %vm437_vm1, %v424_v23, %v428_v17  ;;  %v445_v29 = vsel %vm437_vm1, %v420_v60, %v424_v23 }
 0x123   : > { %v470_v26 = vadd.f32 %v443_v24, %v408_v53  ;;  %v469_v30 = vadd.f32 %v445_v29, %v407_v55 }
 0x125   : > { %477 = vrot.lane.b32.xlu0 %v464_v25, %s2570_s14  ;;  %483 = vrot.lane.b32.xlu1 %v470_v26, %s2570_s14 }
 0x129   : > { %475 = vrot.lane.b32.xlu1 %v468_v28, %s2570_s14 }
 0x12d   : > { %479 = vrot.lane.b32.xlu1 %v469_v30, %s2570_s14 }
 0x187   : > { %v490_v31 = vpop.permute.xlu0 %489 }
 0x18b   : > { %v486_v32 = vpop.permute.xlu0 %485 }
 0x18c   : > { %v494_v33 = vsel %vm493_vm3, %v486_v32, %v490_v31 }
 0x18d   : > { %v523_v34 = vadd.f32 %v494_v33, %v467_v62 }
 0x18f   : > { %v482_v35 = vpop.permute.xlu0 %481  ;;  %545 = vrot.lane.b32.xlu0 %v523_v34, %s2571_s15  ;;  %v492_v36 = vpop.permute.xlu1 %491 }
 0x190   : > { %v496_v37 = vsel %vm493_vm3, %v482_v35, %v486_v32 }
 0x191   : > { %v522_v38 = vadd.f32 %v496_v37, %v466_v2 }
 0x193   : > { %v474_v39 = vpop.permute.xlu0 %473  ;;  %541 = vrot.lane.b32.xlu0 %v522_v38, %s2571_s15  ;;  %v488_v40 = vpop.permute.xlu1 %487 }
 0x194   : > { %v495_v41 = vsel %vm493_vm3, %v488_v40, %v492_v36  ;;  %v502_v43 = vsel %vm493_vm3, %v490_v31, %v474_v39 }
 0x195   : > { %v528_v42 = vadd.f32 %v495_v41, %v472_v12  ;;  %v509_v50 = vsel %vm504_vm4, %v502_v43, 0.0 }
 0x196   : > { %v519_v52 = vadd.f32 %v509_v50, %v463_v19 }
 0x197   : > { %v478_v44 = vpop.permute.xlu0 %477  ;;  %547 = vrot.lane.b32.xlu1 %v528_v42, %s2571_s15  ;;  %v484_v45 = vpop.permute.xlu1 %483 }
 0x198   : > { %v498_v46 = vsel %vm493_vm3, %v478_v44, %v482_v35  ;;  %v497_v47 = vsel %vm493_vm3, %v484_v45, %v488_v40  ;;  %v500_v53 = vsel %vm493_vm3, %v474_v39, %v478_v44 }
 0x199   : > { %v521_v48 = vadd.f32 %v498_v46, %v465_v10  ;;  %v527_v49 = vadd.f32 %v497_v47, %v471_v20  ;;  %v520_v58 = vadd.f32 %v500_v53, %v464_v25 }
 0x19b   : > { %537 = vrot.lane.b32.xlu0 %v521_v48, %s2571_s15  ;;  %543 = vrot.lane.b32.xlu1 %v527_v49, %s2571_s15  ;;  %v476_v51 = vpop.permute.xlu1 %475 }
 0x19c   : > { %v503_v54 = vsel %vm493_vm3, %v492_v36, %v476_v51 }
 0x19d   : > { %v514_v60 = vsel %vm504_vm4, %v503_v54, 0.0 }
 0x19e   : > { %v524_v61 = vadd.f32 %v514_v60, %v468_v28 }
 0x19f   : > { %529 = vrot.lane.b32.xlu0 %v519_v52, %s2571_s15  ;;  %v480_v55 = vpop.permute.xlu1 %479 }
 0x1a0   : > { %v499_v57 = vsel %vm493_vm3, %v480_v55, %v484_v45  ;;  %v501_v62 = vsel %vm493_vm3, %v476_v51, %v480_v55 }
 0x1a1   : > { %v526_v59 = vadd.f32 %v499_v57, %v470_v26  ;;  %v525_v63 = vadd.f32 %v501_v62, %v469_v30 }
 0x1a3   : > { %533 = vrot.lane.b32.xlu0 %v520_v58, %s2571_s15  ;;  %539 = vrot.lane.b32.xlu1 %v526_v59, %s2571_s15 }
 0x1a7   : > { %531 = vrot.lane.b32.xlu1 %v524_v61, %s2571_s15 }
 0x1ab   : > { %535 = vrot.lane.b32.xlu1 %v525_v63, %s2571_s15 }
 0x201   : > { %v546_v0 = vpop.permute.xlu0 %545 }
 0x205   : > { %v542_v1 = vpop.permute.xlu0 %541 }
 0x206   : > { %v550_v2 = vsel %vm549_vm5, %v542_v1, %v546_v0 }
 0x207   : > { %v579_v4 = vadd.f32 %v550_v2, %v523_v34 }
 0x209   : > { %601 = vrot.lane.b32.xlu0 %v579_v4, %s2572_s16  ;;  %v548_v5 = vpop.permute.xlu1 %547 }
 0x20d   : > { %v538_v6 = vpop.permute.xlu0 %537  ;;  %v544_v8 = vpop.permute.xlu1 %543 }
 0x20e   : > { %v552_v9 = vsel %vm549_vm5, %v538_v6, %v542_v1  ;;  %v551_v10 = vsel %vm549_vm5, %v544_v8, %v548_v5 }
 0x20f   : > { %v578_v12 = vadd.f32 %v552_v9, %v522_v38  ;;  %v584_v16 = vadd.f32 %v551_v10, %v528_v42 }
 0x211   : > { %597 = vrot.lane.b32.xlu0 %v578_v12, %s2572_s16  ;;  %v530_v17 = vpop.permute.xlu0 %529  ;;  %603 = vrot.lane.b32.xlu1 %v584_v16, %s2572_s16 }
 0x212   : > { %v558_v18 = vsel %vm549_vm5, %v546_v0, %v530_v17 }
 0x213   : > { %v565_v25 = vsel %vm560_vm6, %v558_v18, 0.0 }
 0x214   : > { %v575_v27 = vadd.f32 %v565_v25, %v519_v52 }
 0x215   : > { %v534_v19 = vpop.permute.xlu0 %533  ;;  %v540_v20 = vpop.permute.xlu1 %539 }
 0x216   : > { %v554_v21 = vsel %vm549_vm5, %v534_v19, %v538_v6  ;;  %v553_v22 = vsel %vm549_vm5, %v540_v20, %v544_v8  ;;  %v556_v28 = vsel %vm549_vm5, %v530_v17, %v534_v19 }
 0x217   : > { %v577_v23 = vadd.f32 %v554_v21, %v521_v48  ;;  %v583_v24 = vadd.f32 %v553_v22, %v527_v49  ;;  %v576_v32 = vadd.f32 %v556_v28, %v520_v58 }
 0x219   : > { %593 = vrot.lane.b32.xlu0 %v577_v23, %s2572_s16  ;;  %599 = vrot.lane.b32.xlu1 %v583_v24, %s2572_s16  ;;  %v532_v26 = vpop.permute.xlu1 %531 }
 0x21a   : > { %v559_v29 = vsel %vm549_vm5, %v548_v5, %v532_v26 }
 0x21b   : > { %v570_v34 = vsel %vm560_vm6, %v559_v29, 0.0 }
 0x21c   : > { %v580_v35 = vadd.f32 %v570_v34, %v524_v61 }
 0x21d   : > { %585 = vrot.lane.b32.xlu0 %v575_v27, %s2572_s16  ;;  %v536_v30 = vpop.permute.xlu1 %535 }
 0x21e   : > { %v555_v31 = vsel %vm549_vm5, %v536_v30, %v540_v20  ;;  %v557_v36 = vsel %vm549_vm5, %v532_v26, %v536_v30 }
 0x21f   : > { %v582_v33 = vadd.f32 %v555_v31, %v526_v59  ;;  %v581_v37 = vadd.f32 %v557_v36, %v525_v63 }
 0x221   : > { %589 = vrot.lane.b32.xlu0 %v576_v32, %s2572_s16  ;;  %595 = vrot.lane.b32.xlu1 %v582_v33, %s2572_s16 }
 0x225   : > { %587 = vrot.lane.b32.xlu1 %v580_v35, %s2572_s16 }
 0x229   : > { %591 = vrot.lane.b32.xlu1 %v581_v37, %s2572_s16  ;;  %s2171_s16 = scalar_lea.hbm %s4133_s6, %s2366_s9 }
 0x27b   : > { %v602_v38 = vpop.permute.xlu0 %601 }
 0x283   : > { %v598_v39 = vpop.permute.xlu0 %597  ;;  %v604_v42 = vpop.permute.xlu1 %603 }
 0x284   : > { %v606_v40 = vsel %vm605_vm7, %v598_v39, %v602_v38 }
 0x285   : > { %v635_v41 = vadd.f32 %v606_v40, %v579_v4 }
 0x287   : > { %657 = vrot.lane.b32.xlu0 %v635_v41, %s2573_s17 }
 0x28b   : > { %v594_v43 = vpop.permute.xlu0 %593  ;;  %v600_v44 = vpop.permute.xlu1 %599 }
 0x28c   : > { %v608_v45 = vsel %vm605_vm7, %v594_v43, %v598_v39  ;;  %v607_v46 = vsel %vm605_vm7, %v600_v44, %v604_v42 }
 0x28d   : > { %v634_v47 = vadd.f32 %v608_v45, %v578_v12  ;;  %v640_v48 = vadd.f32 %v607_v46, %v584_v16 }
 0x28f   : > { %653 = vrot.lane.b32.xlu0 %v634_v47, %s2573_s17  ;;  %v586_v49 = vpop.permute.xlu0 %585  ;;  %659 = vrot.lane.b32.xlu1 %v640_v48, %s2573_s17 }
 0x290   : > { %v614_v50 = vsel %vm605_vm7, %v602_v38, %v586_v49 }
 0x291   : > { %v621_v58 = vsel %vm616_vm8, %v614_v50, 0.0 }
 0x292   : > { %v631_v60 = vadd.f32 %v621_v58, %v575_v27 }
 0x293   : > { %v590_v51 = vpop.permute.xlu0 %589  ;;  %v596_v52 = vpop.permute.xlu1 %595 }
 0x294   : > { %v610_v53 = vsel %vm605_vm7, %v590_v51, %v594_v43  ;;  %v609_v54 = vsel %vm605_vm7, %v596_v52, %v600_v44  ;;  %v612_v61 = vsel %vm605_vm7, %v586_v49, %v590_v51 }
 0x295   : > { %v633_v55 = vadd.f32 %v610_v53, %v577_v23  ;;  %v639_v57 = vadd.f32 %v609_v54, %v583_v24  ;;  %v632_v1 = vadd.f32 %v612_v61, %v576_v32 }
 0x297   : > { %649 = vrot.lane.b32.xlu0 %v633_v55, %s2573_s17  ;;  %655 = vrot.lane.b32.xlu1 %v639_v57, %s2573_s17  ;;  %v588_v59 = vpop.permute.xlu1 %587 }
 0x298   : > { %v615_v62 = vsel %vm605_vm7, %v604_v42, %v588_v59 }
 0x299   : > { %v626_v4 = vsel %vm616_vm8, %v615_v62, 0.0 }
 0x29a   : > { %v636_v5 = vadd.f32 %v626_v4, %v580_v35 }
 0x29b   : > { %641 = vrot.lane.b32.xlu0 %v631_v60, %s2573_s17  ;;  %v592_v63 = vpop.permute.xlu1 %591 }
 0x29c   : > { %v611_v0 = vsel %vm605_vm7, %v592_v63, %v596_v52  ;;  %v613_v6 = vsel %vm605_vm7, %v588_v59, %v592_v63 }
 0x29d   : > { %v638_v2 = vadd.f32 %v611_v0, %v582_v33  ;;  %v637_v8 = vadd.f32 %v613_v6, %v581_v37 }
 0x29f   : > { %645 = vrot.lane.b32.xlu0 %v632_v1, %s2573_s17  ;;  %651 = vrot.lane.b32.xlu1 %v638_v2, %s2573_s17 }
 0x2a3   : > { %643 = vrot.lane.b32.xlu1 %v636_v5, %s2573_s17 }
 0x2a7   : > { %647 = vrot.lane.b32.xlu1 %v637_v8, %s2573_s17  ;;  %s2157_s17 = scalar_lea.sflag [#allocation5], %s306_s7 }
 0x2f9   : > { %v658_v9 = vpop.permute.xlu0 %657 }
 0x301   : > { %v654_v10 = vpop.permute.xlu0 %653  ;;  %v660_v17 = vpop.permute.xlu1 %659 }
 0x302   : > { %v662_v12 = vsel %vm661_vm9, %v654_v10, %v658_v9 }
 0x303   : > { %v691_v16 = vadd.f32 %v662_v12, %v635_v41 }
 0x305   : > { %713 = vrot.lane.b32.xlu0 %v691_v16, %s2574_s18 }
 0x309   : > { %v650_v18 = vpop.permute.xlu0 %649  ;;  %v656_v19 = vpop.permute.xlu1 %655 }
 0x30a   : > { %v664_v20 = vsel %vm661_vm9, %v650_v18, %v654_v10  ;;  %v663_v21 = vsel %vm661_vm9, %v656_v19, %v660_v17 }
 0x30b   : > { %v690_v22 = vadd.f32 %v664_v20, %v634_v47  ;;  %v696_v23 = vadd.f32 %v663_v21, %v640_v48  ;;  %v1976_v20 = vld [vmem:[%s4131_s4] sm:$0xff] }
 0x30d   : > { %709 = vrot.lane.b32.xlu0 %v690_v22, %s2574_s18  ;;  %v642_v24 = vpop.permute.xlu0 %641  ;;  %715 = vrot.lane.b32.xlu1 %v696_v23, %s2574_s18 }
 0x30e   : > { %v670_v25 = vsel %vm661_vm9, %v658_v9, %v642_v24 }
 0x30f   : > { %v677_v32 = vsel %vm672_vm10, %v670_v25, 0.0 }
 0x310   : > { %v687_v34 = vadd.f32 %v677_v32, %v631_v60 }
 0x311   : > { %v646_v26 = vpop.permute.xlu0 %645  ;;  %v652_v27 = vpop.permute.xlu1 %651 }
 0x312   : > { %v668_v28 = vsel %vm661_vm9, %v642_v24, %v646_v26  ;;  %v665_v29 = vsel %vm661_vm9, %v652_v27, %v656_v19  ;;  %v666_v35 = vsel %vm661_vm9, %v646_v26, %v650_v18  ;;  %v1977_v24 = vld [vmem:[%s4131_s4 + $0x8] sm:$0xff] }
 0x313   : > { %v688_v30 = vadd.f32 %v668_v28, %v632_v1  ;;  %v695_v31 = vadd.f32 %v665_v29, %v639_v57  ;;  %v689_v39 = vadd.f32 %v666_v35, %v633_v55 }
 0x315   : > { %701 = vrot.lane.b32.xlu0 %v688_v30, %s2574_s18  ;;  %711 = vrot.lane.b32.xlu1 %v695_v31, %s2574_s18  ;;  %v644_v33 = vpop.permute.xlu1 %643 }
 0x316   : > { %v671_v36 = vsel %vm661_vm9, %v660_v17, %v644_v33  ;;  %v884_v17 = vld [vmem:[#allocation2] sm:$0xff] }
 0x317   : > { %v682_v41 = vsel %vm672_vm10, %v671_v36, 0.0 }
 0x318   : > { %v692_v42 = vadd.f32 %v682_v41, %v636_v5 }
 0x319   : > { %697 = vrot.lane.b32.xlu0 %v687_v34, %s2574_s18  ;;  %v648_v37 = vpop.permute.xlu1 %647 }
 0x31a   : > { %v669_v38 = vsel %vm661_vm9, %v644_v33, %v648_v37  ;;  %v667_v43 = vsel %vm661_vm9, %v648_v37, %v652_v27 }
 0x31b   : > { %v693_v40 = vadd.f32 %v669_v38, %v637_v8  ;;  %v694_v44 = vadd.f32 %v667_v43, %v638_v2 }
 0x31d   : > { %705 = vrot.lane.b32.xlu0 %v689_v39, %s2574_s18  ;;  %703 = vrot.lane.b32.xlu1 %v693_v40, %s2574_s18 }
 0x321   : > { %699 = vrot.lane.b32.xlu1 %v692_v42, %s2574_s18 }
 0x325   : > { %707 = vrot.lane.b32.xlu1 %v694_v44, %s2574_s18 }
 0x377   : > { %v714_v45 = vpop.permute.xlu0 %713 }
 0x37f   : > { %v710_v46 = vpop.permute.xlu0 %709  ;;  %v716_v49 = vpop.permute.xlu1 %715 }
 0x380   : > { %v718_v47 = vsel %vm717_vm11, %v710_v46, %v714_v45 }
 0x381   : > { %v2922_v48 = vadd.f32 %v718_v47, %v691_v16 }
 0x383   : > { %769 = vrot.lane.b32.xlu0 %v2922_v48, %s2575_s19 }
 0x387   : > { %v702_v50 = vpop.permute.xlu0 %701  ;;  %v712_v51 = vpop.permute.xlu1 %711 }
 0x388   : > { %v719_v52 = vsel %vm717_vm11, %v712_v51, %v716_v49 }
 0x389   : > { %v2928_v53 = vadd.f32 %v719_v52, %v696_v23  ;;  %v885_v23 = vld [vmem:[#allocation2 + $0x8] sm:$0xff] }
 0x38b   : > { %v698_v54 = vpop.permute.xlu0 %697  ;;  %771 = vrot.lane.b32.xlu1 %v2928_v53, %s2575_s19 }
 0x38c   : > { %v724_v63 = vsel %vm717_vm11, %v698_v54, %v702_v50  ;;  %v726_v0 = vsel %vm717_vm11, %v714_v45, %v698_v54 }
 0x38d   : > { %v744_v4 = vadd.f32 %v724_v63, %v688_v30  ;;  %v733_v6 = vsel %vm728_vm12, %v726_v0, 0.0 }
 0x38e   : > { %v743_v9 = vadd.f32 %v733_v6, %v687_v34 }
 0x38f   : > { %v706_v55 = vpop.permute.xlu0 %705  ;;  %v704_v57 = vpop.permute.xlu1 %703 }
 0x390   : > { %v720_v58 = vsel %vm717_vm11, %v706_v55, %v710_v46  ;;  %v722_v60 = vsel %vm717_vm11, %v702_v50, %v706_v55 }
 0x391   : > { %v746_v59 = vadd.f32 %v720_v58, %v690_v22  ;;  %v745_v62 = vadd.f32 %v722_v60, %v689_v39  ;;  %v2075_v22 = vld [vmem:[#allocation3] sm:$0x1] }
 0x393   : > { %765 = vrot.lane.b32.xlu0 %v746_v59, %s2575_s19  ;;  %v700_v61 = vpop.permute.xlu1 %699 }
 0x394   : > { %v725_v12 = vsel %vm717_vm11, %v700_v61, %v704_v57  ;;  %v727_v16 = vsel %vm717_vm11, %v716_v49, %v700_v61 }
 0x395   : > { %v749_v18 = vadd.f32 %v725_v12, %v693_v40  ;;  %v738_v19 = vsel %vm728_vm12, %v727_v16, 0.0 }
 0x396   : > { %v748_v21 = vadd.f32 %v738_v19, %v692_v42 }
 0x397   : > { %761 = vrot.lane.b32.xlu0 %v745_v62, %s2575_s19  ;;  %v708_v1 = vpop.permute.xlu1 %707 }
 0x398   : > { %v721_v2 = vsel %vm717_vm11, %v708_v1, %v712_v51  ;;  %v723_v8 = vsel %vm717_vm11, %v704_v57, %v708_v1 }
 0x399   : > { %v2945_v5 = vadd.f32 %v721_v2, %v695_v31  ;;  %v750_v10 = vadd.f32 %v723_v8, %v694_v44 }
 0x39b   : > { %757 = vrot.lane.b32.xlu0 %v744_v4, %s2575_s19  ;;  %767 = vrot.lane.b32.xlu1 %v2945_v5, %s2575_s19 }
 0x39f   : > { %753 = vrot.lane.b32.xlu0 %v743_v9, %s2575_s19  ;;  %763 = vrot.lane.b32.xlu1 %v750_v10, %s2575_s19 }
 0x3a3   : > { %888 = vperm.xlu0 %2437, %v884_v17   ;;  %759 = vrot.lane.b32.xlu1 %v749_v18, %s2575_s19 }
 0x3a7   : > { %1980 = vperm.xlu0 %2437, %v1976_v20   ;;  %755 = vrot.lane.b32.xlu1 %v748_v21, %s2575_s19  ;;  %s2583_s19 = smov [#allocation4]  }
 0x3a8   : > { %s2494_s26 = sshll.u32 %s2583_s19, 4  ;;  %s2495_s26 = int_to_ptr.vmem [resolvable:$false] %s2494_s26 }
 0x3a9   : > { %s2496_s20 = scalar_lea.vmem %s2495_s26, 160 }
 0x3ab   : > { %2078 = vperm.xlu0 %2437, %v2075_v22   ;;  %893 = vperm.xlu1 %2438, %v885_v23  }
 0x3af   : > { %1985 = vperm.xlu1 %2438, %v1977_v24  }
 0x3f5   : > { %v770_v25 = vpop.permute.xlu0 %769 }
 0x3fd   : > { %v2970_v27 = vpop.permute.xlu1 %771 }
 0x405   : > { %v766_v26 = vpop.permute.xlu0 %765 }
 0x406   : > { %v774_v40 = vsel %vm773_vm13, %v766_v26, %v770_v25 }
 0x407   : > { %v803_v46 = vadd.f32 %v774_v40, %v2922_v48 }
 0x409   : > { %v762_v28 = vpop.permute.xlu0 %761 }
 0x40a   : > { %v776_v29 = vsel %vm773_vm13, %v762_v28, %v766_v26 }
 0x40b   : > { %v802_v33 = vadd.f32 %v776_v29, %v746_v59 }
 0x40d   : > { %v758_v30 = vpop.permute.xlu0 %757  ;;  %v2975_v31 = vpop.permute.xlu1 %767  ;;  %v828_v51 = vadd.f32 %v803_v46, %v802_v33 }
 0x40e   : > { %v778_v32 = vsel %vm773_vm13, %v758_v30, %v762_v28 }
 0x40f   : > { %v801_v34 = vadd.f32 %v778_v32, %v745_v62 }
 0x411   : > { %v827_v35 = vadd.f32 %v802_v33, %v801_v34  ;;  %v754_v36 = vpop.permute.xlu0 %753  ;;  %v764_v37 = vpop.permute.xlu1 %763 }
 0x412   : > { %v780_v38 = vsel %vm773_vm13, %v754_v36, %v758_v30  ;;  %v782_v39 = vsel %vm773_vm13, %v770_v25, %v754_v36  ;;  %v777_v54 = vsel %vm773_vm13, %v764_v37, %v2975_v31 }
 0x413   : > { %v789_v41 = vsel %vm784_vm14, %v782_v39, 0.0  ;;  %v800_v42 = vadd.f32 %v780_v38, %v744_v4  ;;  %v3002_v62 = vadd.f32 %v777_v54, %v2945_v5 }
 0x414   : > { %v799_v43 = vadd.f32 %v789_v41, %v743_v9 }
 0x415   : > { %v826_v44 = vadd.f32 %v801_v34, %v800_v42  ;;  %v760_v45 = vpop.permute.xlu1 %759 }
 0x416   : > { %v825_v47 = vadd.f32 %v800_v42, %v799_v43  ;;  %v779_v50 = vsel %vm773_vm13, %v760_v45, %v764_v37 }
 0x417   : > { %v851_v49 = vadd.f32 %v826_v44, %v799_v43  ;;  %v853_v57 = vadd.f32 %v828_v51, %v826_v44  ;;  %v806_v58 = vadd.f32 %v779_v50, %v750_v10 }
 0x418   : > { %v852_v52 = vadd.f32 %v827_v35, %v825_v47 }
 0x419   : > { %v756_v55 = vpop.permute.xlu1 %755  ;;  %v832_v1 = vadd.f32 %v3002_v62, %v806_v58  ;;  %v878_v6 = vadd.f32 %v853_v57, %v799_v43 }
 0x41a   : > { %v781_v59 = vsel %vm773_vm13, %v756_v55, %v760_v45  ;;  %v783_v48 = vsel %vm773_vm13, %v2970_v27, %v756_v55 }
 0x41b   : > { %v794_v60 = vsel %vm784_vm14, %v783_v48, 0.0  ;;  %v805_v61 = vadd.f32 %v781_v59, %v749_v18 }
 0x41c   : > { %v3004_v63 = vadd.f32 %v794_v60, %v748_v21 }
 0x41d   : > { %v3006_v0 = vadd.f32 %v806_v58, %v805_v61 }
 0x41e   : > { %v3010_v2 = vadd.f32 %v805_v61, %v3004_v63  ;;  %v889_v4 = vpop.permute.xlu0 %888 }
 0x41f   : > { %v3014_v8 = vadd.f32 %v3006_v0, %v3004_v63  ;;  %v896_v9 = vadd.f32 %v889_v4, %v799_v43  ;;  %v897_v10 = vadd.f32 %v889_v4, %v825_v47  ;;  %v898_v12 = vadd.f32 %v889_v4, %v851_v49 }
 0x420   : > { %v3017_v5 = vadd.f32 %v832_v1, %v3010_v2  ;;  %v899_v16 = vadd.f32 %v889_v4, %v852_v52  ;;  %v900_v17 = vadd.f32 %v889_v4, %v878_v6 }
 0x421   : > { %v906_v18 = vfloor.f32 %v896_v9  ;;  %v907_v19 = vfloor.f32 %v897_v10  ;;  %v908_v20 = vfloor.f32 %v898_v12 }
 0x422   : > { %v910_v21 = vfloor.f32 %v900_v17  ;;  %v909_v22 = vfloor.f32 %v899_v16 }
 0x423   : > { %v916_v23 = vsub.f32 %v896_v9, %v906_v18  ;;  %v917_v24 = vsub.f32 %v897_v10, %v907_v19  ;;  %v918_v25 = vsub.f32 %v898_v12, %v908_v20  ;;  %v4143_v9 = vmov 683565275  }
 0x424   : > { %v3019_v26 = vsub.f32 %v900_v17, %v910_v21  ;;  %v919_v32 = vsub.f32 %v899_v16, %v909_v22  ;;  %v4149_v12 = vmov 2475754826   ;;  %v4147_v18 = vmov 2131351028  }
 0x425   : > { %v3021_v28 = vmul.f32 6.2831855, %v916_v23  ;;  %v3023_v29 = vmul.f32 6.2831855, %v917_v24  ;;  %v3025_v30 = vmul.f32 6.2831855, %v918_v25 }
 0x426   : > { %2147 = vrot.lane.b32.xlu1 %v3019_v26, %s2569_s13  ;;  %v3034_v41 = vmul.f32 6.2831855, %v919_v32  ;;  %v4136_v23 = vmov 2102212464  }
 0x427   : > { %v939_v33 = vand.u32 2139095040, %v3021_v28  ;;  %v1043_v34 = vand.u32 2139095040, %v3023_v29  ;;  %v1147_v35 = vand.u32 2139095040, %v3025_v30  ;;  %v936_v36 = vand.u32 2147483647, %v3021_v28 }
 0x428   : > { %v1040_v37 = vand.u32 2147483647, %v3023_v29  ;;  %v1251_v51 = vand.u32 2139095040, %v3034_v41 }
 0x429   : > { %v940_v38 = vshrl.u32 %v939_v33, 23  ;;  %v1044_v39 = vshrl.u32 %v1043_v34, 23  ;;  %v1148_v40 = vshrl.u32 %v1147_v35, 23  ;;  %v943_v45 = vand.u32 8388607, %v936_v36 }
 0x42a   : > { %v1047_v46 = vand.u32 8388607, %v1040_v37  ;;  %v3043_v60 = vshrl.u32 %v1251_v51, 23  ;;  %v4141_v34 = vmov 920167782  }
 0x42b   : > { %v2280_v42 = vadd.s32 4294967169, %v940_v38  ;;  %v2284_v43 = vadd.s32 4294967169, %v1044_v39  ;;  %v2288_v44 = vadd.s32 4294967169, %v1148_v40  ;;  %v944_v55 = vor.u32 8388608, %v943_v45 }
 0x42c   : > { %v1048_v57 = vor.u32 8388608, %v1047_v46 }
 0x42d   : > { %v946_v47 = vadd.s32 1, %v2280_v42  ;;  %v1050_v49 = vadd.s32 1, %v2284_v43  ;;  %v1154_v50 = vadd.s32 1, %v2288_v44  ;;  %v3047_v4 = vshll.u32 %v944_v55, 8 }
 0x42e   : > { %v3049_v6 = vshll.u32 %v1048_v57, 8  ;;  %v4138_v42 = vmov 1326507024  }
 0x42f   : > { %vm947_vm15 = vcmp.gt.s32.totalorder %v946_v47, 0  ;;  %vm1051_vm1 = vcmp.gt.s32.totalorder %v1050_v49, 0  ;;  %vm1155_vm2 = vcmp.gt.s32.totalorder %v1154_v50, 0 }
 0x430   : > { %v948_v52 = vsel %vm947_vm15, %v946_v47, 0  ;;  %v1052_v54 = vsel %vm1051_vm1, %v1050_v49, 0  ;;  %v3056_v21 = vsel %vm1155_vm2, %v1154_v50, 0 }
 0x431   : > { %v950_v58 = vand.u32 31, %v948_v52  ;;  %v3041_v59 = vand.u32 31, %v1052_v54  ;;  %v949_v61 = vshrl.u32 %v948_v52, 5  ;;  %v3045_v1 = vshrl.u32 %v1052_v54, 5 }
 0x432   : > { %v3066_v50 = vand.u32 31, %v3056_v21 }
 0x433   : > { %v951_v48 = vsub.s32 32, %v950_v58  ;;  %v953_v10 = vshll.u32 %v4143_v9, %v950_v58  ;;  %v956_v17 = vshll.u32 %v4149_v12, %v950_v58  ;;  %v1055_v20 = vsub.s32 32, %v3041_v59 }
 0x434   : > { %v959_v22 = vshll.u32 %v4147_v18, %v950_v58  ;;  %v962_v33 = vshll.u32 %v4136_v23, %v950_v58  ;;  %v965_v40 = vshll.u32 %v4141_v34, %v950_v58  ;;  %vm968_vm3 = vcmp.lt.s32.totalorder %v949_v61, 1 }
 0x435   : > { %v954_v16 = vshrl.u32 %v4149_v12, %v951_v48  ;;  %v957_v19 = vshrl.u32 %v4147_v18, %v951_v48  ;;  %v960_v24 = vshrl.u32 %v4136_v23, %v951_v48  ;;  %v963_v35 = vshrl.u32 %v4141_v34, %v951_v48 }
 0x436   : > { %v952_v38 = vshrl.u32 %v4143_v9, %v951_v48  ;;  %v966_v43 = vshrl.u32 %v4138_v42, %v951_v48  ;;  %vm970_vm4 = vcmp.lt.s32.totalorder %v949_v61, 3  ;;  %vm971_vm5 = vcmp.lt.s32.totalorder %v949_v61, 4 }
 0x437   : > { %v955_v25 = vor.u32 %v954_v16, %v953_v10  ;;  %v958_v32 = vor.u32 %v957_v19, %v956_v17  ;;  %v961_v39 = vor.u32 %v960_v24, %v959_v22  ;;  %v964_v44 = vor.u32 %v963_v35, %v962_v33 }
 0x438   : > { %v967_v45 = vor.u32 %v966_v43, %v965_v40  ;;  %vm969_vm6 = vcmp.lt.s32.totalorder %v949_v61, 2  ;;  %v1058_v58 = vshrl.u32 %v4149_v12, %v1055_v20  ;;  %v1057_v17 = vshll.u32 %v4143_v9, %v3041_v59 }
 0x439   : > { %v972_v46 = vsel %vm968_vm3, %v952_v38, %v955_v25  ;;  %v973_v47 = vsel %vm971_vm5, %v961_v39, 2102212464  ;;  %v976_v49 = vsel %vm968_vm3, %v955_v25, %v958_v32  ;;  %v977_v52 = vsel %vm971_vm5, %v964_v44, 920167782 }
 0x43a   : > { %v974_v51 = vsel %vm970_vm4, %v958_v32, %v973_v47  ;;  %v980_v54 = vsel %vm968_vm3, %v958_v32, %v961_v39  ;;  %v978_v55 = vsel %vm970_vm4, %v961_v39, %v977_v52  ;;  %v981_v57 = vsel %vm971_vm5, %v967_v45, 1326507024 }
 0x43b   : > { %v975_v48 = vsel %vm969_vm6, %v972_v46, %v974_v51  ;;  %v979_v10 = vsel %vm969_vm6, %v976_v49, %v978_v55  ;;  %v982_v16 = vsel %vm970_vm4, %v964_v44, %v981_v57  ;;  %v1060_v25 = vshll.u32 %v4149_v12, %v3041_v59 }
 0x43c   : > { %v983_v19 = vsel %vm969_vm6, %v980_v54, %v982_v16  ;;  %v3075_v22 = vmul.u32.u64.low %v3047_v4, %v979_v10  ;;  %v3076_v24 = vmul.u32.u64.high %v3047_v4, %v979_v10, %v3075_v22  ;;  %v1059_v35 = vor.u32 %v1058_v58, %v1057_v17 }
 0x43d   : > { %v3082_v32 = vmul.u32.u64.low %v3047_v4, %v983_v19  ;;  %v3083_v33 = vmul.u32.u64.high %v3047_v4, %v983_v19, %v3082_v32  ;;  %v1061_v61 = vshrl.u32 %v4147_v18, %v1055_v20  ;;  %v1063_v38 = vshll.u32 %v4147_v18, %v3041_v59 }
 0x43e   : > { %v1064_v39 = vshrl.u32 %v4136_v23, %v1055_v20  ;;  %v1066_v40 = vshll.u32 %v4136_v23, %v3041_v59  ;;  %v1067_v43 = vshrl.u32 %v4141_v34, %v1055_v20  ;;  %v3093_v44 = vsub.s32 32, %v3066_v50 }
 0x43f   : > { %v1062_v45 = vor.u32 %v1061_v61, %v1060_v25  ;;  %v1069_v46 = vshll.u32 %v4141_v34, %v3041_v59  ;;  %v1070_v47 = vshrl.u32 %v4138_v42, %v1055_v20  ;;  %v991_v49 = vmul.u32 %v3047_v4, %v975_v48 }
 0x440   : > { %v994_v51 = vadd.s32 1, %v3076_v24  ;;  %v1065_v52 = vor.u32 %v1064_v39, %v1063_v38  ;;  %v1068_v54 = vor.u32 %v1067_v43, %v1066_v40  ;;  %vm993_vm7 = vc.u32 %v3083_v33, %v3075_v22 }
 0x441   : > { %v1071_v55 = vor.u32 %v1070_v47, %v1069_v46  ;;  %vm1072_vm8 = vcmp.lt.s32.totalorder %v3045_v1, 1  ;;  %vm1075_vm9 = vcmp.lt.s32.totalorder %v3045_v1, 4  ;;  %v1056_v59 = vshrl.u32 %v4143_v9, %v1055_v20 }
 0x442   : > { %v995_v57 = vsel %vm993_vm7, %v994_v51, %v3076_v24  ;;  %v1077_v58 = vsel %vm1075_vm9, %v1065_v52, 2102212464  ;;  %v1080_v10 = vsel %vm1072_vm8, %v1059_v35, %v1062_v45  ;;  %vm1074_vm10 = vcmp.lt.s32.totalorder %v3045_v1, 3 }
 0x443   : > { %v996_v16 = vadd.s32 %v995_v57, %v991_v49  ;;  %v1081_v4 = vsel %vm1075_vm9, %v1068_v54, 920167782  ;;  %v1084_v48 = vsel %vm1072_vm8, %v1062_v45, %v1065_v52  ;;  %vm1073_vm11 = vcmp.lt.s32.totalorder %v3045_v1, 2 }
 0x444   : > { %v1076_v17 = vsel %vm1072_vm8, %v1056_v59, %v1059_v35  ;;  %v1082_v19 = vsel %vm1074_vm10, %v1065_v52, %v1081_v4  ;;  %v1085_v25 = vsel %vm1075_vm9, %v1071_v55, 1326507024  ;;  %v1078_v61 = vsel %vm1074_vm10, %v1062_v45, %v1077_v58 }
 0x445   : > { %v997_v32 = vadd.s32 536870912, %v996_v16  ;;  %v1083_v38 = vsel %vm1073_vm11, %v1080_v10, %v1082_v19  ;;  %v1086_v39 = vsel %vm1074_vm10, %v1068_v54, %v1085_v25  ;;  %v2292_v1 = vadd.s32 4294967169, %v3043_v60 }
 0x446   : > { %v1087_v40 = vsel %vm1073_vm11, %v1084_v48, %v1086_v39  ;;  %v3109_v24 = vmul.u32.u64.low %v3049_v6, %v1083_v38  ;;  %v3110_v20 = vmul.u32.u64.high %v3049_v6, %v1083_v38, %v3109_v24  ;;  %v1079_v35 = vsel %vm1073_vm11, %v1076_v17, %v1078_v61 }
 0x447   : > { %v3113_v43 = vshrl.u32 %v997_v32, 30  ;;  %v3116_v46 = vmul.u32.u64.low %v3049_v6, %v1087_v40  ;;  %v3117_v47 = vmul.u32.u64.high %v3049_v6, %v1087_v40, %v3116_v46  ;;  %v3121_v49 = vshrl.u32 %v3056_v21, 5 }
 0x448   : > { %v4135_v51 = vand.u32 2147483647, %v3025_v30  ;;  %v1165_v52 = vshrl.u32 %v4147_v18, %v3093_v44  ;;  %v1098_v54 = vadd.s32 1, %v3110_v20  ;;  %v1168_v55 = vshrl.u32 %v4136_v23, %v3093_v44 }
 0x449   : > { %v999_v45 = vshll.u32 %v3113_v43, 30  ;;  %v1170_v57 = vshll.u32 %v4136_v23, %v3066_v50  ;;  %v1171_v60 = vshrl.u32 %v4141_v34, %v3093_v44  ;;  %v1095_v21 = vmul.u32 %v3049_v6, %v1079_v35 }
 0x44a   : > { %vm1097_vm12 = vc.u32 %v3117_v47, %v3109_v24  ;;  %v1162_v59 = vshrl.u32 %v4149_v12, %v3093_v44  ;;  %v1164_v58 = vshll.u32 %v4149_v12, %v3066_v50  ;;  %v1167_v48 = vshll.u32 %v4147_v18, %v3066_v50 }
 0x44b   : > { %v3141_v10 = vsub.s32 %v996_v16, %v999_v45  ;;  %v1099_v4 = vsel %vm1097_vm12, %v1098_v54, %v3110_v20  ;;  %v1172_v17 = vor.u32 %v1171_v60, %v1170_v57  ;;  %v1161_v6 = vshll.u32 %v4143_v9, %v3066_v50 }
 0x44c   : > { %v1100_v19 = vadd.s32 %v1099_v4, %v1095_v21  ;;  %v1173_v25 = vshll.u32 %v4141_v34, %v3066_v50  ;;  %v1174_v32 = vshrl.u32 %v4138_v42, %v3093_v44  ;;  %v1258_v61 = vadd.s32 1, %v2292_v1 }
 0x44d   : > { %v1151_v16 = vand.u32 8388607, %v4135_v51  ;;  %v1166_v38 = vor.u32 %v1165_v52, %v1164_v58  ;;  %v1169_v39 = vor.u32 %v1168_v55, %v1167_v48  ;;  %v1163_v20 = vor.u32 %v1162_v59, %v1161_v6 }
 0x44e   : > { %v1101_v40 = vadd.s32 536870912, %v1100_v19  ;;  %v1175_v46 = vor.u32 %v1174_v32, %v1173_v25  ;;  %vm1179_vm14 = vcmp.lt.s32.totalorder %v3121_v49, 4  ;;  %v1002_v35 = vsub.s32 0, %v3141_v10 }
 0x44f   : > { %v1185_v45 = vsel %vm1179_vm14, %v1172_v17, 920167782  ;;  %vm1176_vm15 = vcmp.lt.s32.totalorder %v3121_v49, 1  ;;  %v1152_v1 = vor.u32 8388608, %v1151_v16  ;;  %vm1178_vm1 = vcmp.lt.s32.totalorder %v3121_v49, 3 }
 0x450   : > { %v3159_v50 = vshrl.u32 %v1101_v40, 30  ;;  %v1188_v52 = vsel %vm1176_vm15, %v1166_v38, %v1169_v39  ;;  %vm1259_vm2 = vcmp.gt.s32.totalorder %v1258_v61, 0  ;;  %v1184_v54 = vsel %vm1176_vm15, %v1163_v20, %v1166_v38 }
 0x451   : > { %v1186_v55 = vsel %vm1178_vm1, %v1169_v39, %v1185_v45  ;;  %v1189_v57 = vsel %vm1179_vm14, %v1175_v46, 1326507024  ;;  %v2281_v60 = vmin.u32 %v1002_v35, %v3141_v10  ;;  %vm1177_vm3 = vcmp.lt.s32.totalorder %v3121_v49, 2 }
 0x452   : > { %v1103_v21 = vshll.u32 %v3159_v50, 30  ;;  %v1190_v59 = vsel %vm1178_vm1, %v1172_v17, %v1189_v57  ;;  %v1181_v48 = vsel %vm1179_vm14, %v1169_v39, 2102212464  ;;  %v1187_v6 = vsel %vm1177_vm3, %v1184_v54, %v1186_v55 }
 0x453   : > { %v1191_v58 = vsel %vm1177_vm3, %v1188_v52, %v1190_v59  ;;  %v1192_v25 = vshll.u32 %v1152_v1, 8  ;;  %v1260_v32 = vsel %vm1259_vm2, %v1258_v61, 0  ;;  %v1160_v16 = vshrl.u32 %v4143_v9, %v3093_v44 }
 0x454   : > { %v3177_v4 = vsub.s32 %v1100_v19, %v1103_v21  ;;  %v1004_v40 = vclz %v2281_v60  ;;  %v1182_v39 = vsel %vm1178_vm1, %v1166_v38, %v1181_v48  ;;  %v1262_v61 = vand.u32 31, %v1260_v32 }
 0x455   : > { %v3186_v17 = vmul.u32.u64.low %v1192_v25, %v1191_v58  ;;  %v3187_v35 = vmul.u32.u64.high %v1192_v25, %v1191_v58, %v3186_v17  ;;  %v1180_v19 = vsel %vm1176_vm15, %v1160_v16, %v1163_v20  ;;  %v4140_v59 = vand.u32 2147483647, %v3034_v41 }
 0x456   : > { %v1106_v46 = vsub.s32 0, %v3177_v4  ;;  %v3193_v45 = vmul.u32.u64.low %v1192_v25, %v1187_v6  ;;  %v3194_v52 = vmul.u32.u64.high %v1192_v25, %v1187_v6, %v3193_v45  ;;  %v2282_v1 = vadd.s32 4294967294, %v1004_v40 }
 0x457   : > { %v1183_v54 = vsel %vm1177_vm3, %v1180_v19, %v1182_v39  ;;  %v1263_v55 = vsub.s32 32, %v1262_v61  ;;  %v1261_v19 = vshrl.u32 %v1260_v32, 5  ;;  %v1277_v3 = vshll.u32 %v4141_v34, %v1262_v61 }
 0x458   : > { %v2285_v44 = vmin.u32 %v1106_v46, %v3177_v4  ;;  %vm1201_vm4 = vc.u32 %v3187_v35, %v3193_v45  ;;  %v1202_v20 = vadd.s32 1, %v3194_v52  ;;  %v1199_v57 = vmul.u32 %v1192_v25, %v1183_v54 }
 0x459   : > { %vm2283_vm5 = vcmp.lt.s32.totalorder %v2282_v1, 0  ;;  %v1266_v58 = vshrl.u32 %v4149_v12, %v1263_v55  ;;  %v1269_v48 = vshrl.u32 %v4147_v18, %v1263_v55  ;;  %v1275_v16 = vshrl.u32 %v4141_v34, %v1263_v55 }
 0x45a   : > { %v1108_v38 = vclz %v2285_v44  ;;  %v1203_v60 = vsel %vm1201_vm4, %v1202_v20, %v3194_v52  ;;  %v3207_v49 = vsel %vm2283_vm5, 0, %v2282_v1  ;;  %v1265_v46 = vshll.u32 %v4143_v9, %v1262_v61 }
 0x45b   : > { %v1204_v21 = vadd.s32 %v1203_v60, %v1199_v57  ;;  %v1268_v25 = vshll.u32 %v4149_v12, %v1262_v61  ;;  %v1272_v17 = vshrl.u32 %v4136_v23, %v1263_v55  ;;  %v1274_v52 = vshll.u32 %v4136_v23, %v1262_v61 }
 0x45c   : > { %v2286_v40 = vadd.s32 4294967294, %v1108_v38  ;;  %v1278_v44 = vshrl.u32 %v4138_v42, %v1263_v55  ;;  %v1255_v1 = vand.u32 8388607, %v4140_v59  ;;  %v1267_v54 = vor.u32 %v1266_v58, %v1265_v46 }
 0x45d   : > { %v1205_v6 = vadd.s32 536870912, %v1204_v21  ;;  %v1270_v20 = vor.u32 %v1269_v48, %v1268_v25  ;;  %v1271_v57 = vshll.u32 %v4147_v18, %v1262_v61  ;;  %v1012_v38 = vsub.s32 4294967266, %v3207_v49 }
 0x45e   : > { %v1276_v60 = vor.u32 %v1275_v16, %v1274_v52  ;;  %vm2287_vm6 = vcmp.lt.s32.totalorder %v2286_v40, 0  ;;  %v1279_v51 = vor.u32 %v1278_v44, %v1277_v3  ;;  %vm1280_vm7 = vcmp.lt.s32.totalorder %v1261_v19, 1 }
 0x45f   : > { %v3213_v39 = vshrl.u32 %v1205_v6, 30  ;;  %v1273_v6 = vor.u32 %v1272_v17, %v1271_v57  ;;  %v1256_v23 = vor.u32 8388608, %v1255_v1  ;;  %vm1283_vm8 = vcmp.lt.s32.totalorder %v1261_v19, 4 }
 0x460   : > { %v1288_v42 = vsel %vm1280_vm7, %v1267_v54, %v1270_v20  ;;  %v1013_v59 = vadd.s32 127, %v1012_v38  ;;  %v1111_v58 = vsel %vm2287_vm6, 0, %v2286_v40  ;;  %vm1282_vm9 = vcmp.lt.s32.totalorder %v1261_v19, 3 }
 0x461   : > { %v1207_v32 = vshll.u32 %v3213_v39, 30  ;;  %v1289_v48 = vsel %vm1283_vm8, %v1276_v60, 920167782  ;;  %v1264_v16 = vshrl.u32 %v4143_v9, %v1263_v55  ;;  %vm1281_vm10 = vcmp.lt.s32.totalorder %v1261_v19, 2 }
 0x462   : > { %v1290_v61 = vsel %vm1282_vm9, %v1273_v6, %v1289_v48  ;;  %v1285_v25 = vsel %vm1283_vm8, %v1273_v6, 2102212464  ;;  %v1292_v3 = vsel %vm1280_vm7, %v1270_v20, %v1273_v6  ;;  %v1293_v52 = vsel %vm1283_vm8, %v1279_v51, 1326507024 }
 0x463   : > { %v3224_v46 = vsub.s32 %v1204_v21, %v1207_v32  ;;  %v1291_v17 = vsel %vm1281_vm10, %v1288_v42, %v1290_v61  ;;  %v1116_v44 = vsub.s32 4294967266, %v1111_v58  ;;  %v1294_v1 = vsel %vm1282_vm9, %v1276_v60, %v1293_v52 }
 0x464   : > { %v1296_v57 = vshll.u32 %v1256_v23, 8  ;;  %v1008_v40 = vsub.s32 32, %v3207_v49  ;;  %v1284_v21 = vsel %vm1280_vm7, %v1264_v16, %v1267_v54  ;;  %v3234_v38 = vmul.f32 6.2831855, %v3019_v26 }
 0x465   : > { %v1286_v55 = vsel %vm1282_vm9, %v1270_v20, %v1285_v25  ;;  %v1295_v32 = vsel %vm1281_vm10, %v1292_v3, %v1294_v1  ;;  %v1014_v51 = vshll.u32 %v1013_v59, 23  ;;  %v1210_v6 = vsub.s32 0, %v3224_v46 }
 0x466   : > { %4174 = vst [vmem:[#allocation12_spill] sm:$0xff] %v3234_v38  ;;  %v3238_v48 = vmul.u32.u64.low %v1296_v57, %v1291_v17  ;;  %v3239_v42 = vmul.u32.u64.high %v1296_v57, %v1291_v17, %v3238_v48  ;;  %v3243_v60 = vmul.u32.u64.low %v1296_v57, %v1295_v32  ;;  %v3244_v23 = vmul.u32.u64.high %v1296_v57, %v1295_v32, %v3243_v60 }
 0x467   : > { %v992_v54 = vadd.s32 %v3075_v22, %v3083_v33  ;;  %v1117_v16 = vadd.s32 127, %v1116_v44  ;;  %v1287_v26 = vsel %vm1281_vm10, %v1284_v21, %v1286_v55  ;;  %v1355_v20 = vand.u32 2139095040, %v3234_v38 }
 0x468   : > { %v1112_v25 = vsub.s32 32, %v1111_v58  ;;  %v1306_v17 = vadd.s32 1, %v3239_v42  ;;  %v1009_v59 = vshll.u32 %v3141_v10, %v3207_v49  ;;  %v1015_v3 = vor.u32 4788187, %v1014_v51 }
 0x469   : > { %v1010_v61 = vshrl.u32 %v992_v54, %v1008_v40  ;;  %v1096_v52 = vadd.s32 %v3109_v24, %v3117_v47  ;;  %v2289_v1 = vmin.u32 %v1210_v6, %v3224_v46  ;;  %v1118_v32 = vshll.u32 %v1117_v16, 23 }
 0x46a   : > { %v1303_v22 = vmul.u32 %v1296_v57, %v1287_v26  ;;  %vm1305_vm11 = vc.u32 %v3244_v23, %v3238_v48  ;;  %v1356_v33 = vshrl.u32 %v1355_v20, 23  ;;  %v1016_v60 = vand.u32 2147483647, %v1015_v3 }
 0x46b   : > { %v1307_v19 = vsel %vm1305_vm11, %v1306_v17, %v3239_v42  ;;  %v1011_v44 = vor.u32 %v1010_v61, %v1009_v59  ;;  %v1114_v40 = vshrl.u32 %v1096_v52, %v1112_v25  ;;  %v1212_v10 = vclz %v2289_v1 }
 0x46c   : > { %v1308_v21 = vadd.s32 %v1307_v19, %v1303_v22  ;;  %v2296_v55 = vadd.s32 4294967169, %v1356_v33  ;;  %v1113_v49 = vshll.u32 %v3177_v4, %v1111_v58  ;;  %v1119_v51 = vor.u32 4788187, %v1118_v32  ;;  %v3277_v32 = vpop.permute.xlu1 %893 }
 0x46d   : > { %v1018_v6 = vcvt.s32.f32 %v1011_v44  ;;  %v2290_v16 = vadd.s32 4294967294, %v1212_v10  ;;  %v775_v42 = vsel %vm773_vm13, %v2975_v31, %v2970_v27  ;;  %v1022_v61 = vsub.s32 4, %v3113_v43 }
 0x46e   : > { %v1309_v24 = vadd.s32 536870912, %v1308_v21  ;;  %v1362_v47 = vadd.s32 1, %v2296_v55  ;;  %v1115_v54 = vor.u32 %v1114_v40, %v1113_v49  ;;  %v1120_v25 = vand.u32 2147483647, %v1119_v51 }
 0x46f   : > { %v1019_v20 = vmul.f32 %v1018_v6, %v1016_v60  ;;  %v808_v59 = vadd.f32 %v775_v42, %v2928_v53  ;;  %vm938_vm14 = vcmp.lt.s32.totalorder %v3021_v28, 0  ;;  %vm2291_vm15 = vcmp.lt.s32.totalorder %v2290_v16, 0 }
 0x470   : > { %v3260_v57 = vshrl.u32 %v1309_v24, 30  ;;  %vm1363_vm12 = vcmp.gt.s32.totalorder %v1362_v47, 0  ;;  %v1122_v58 = vcvt.s32.f32 %v1115_v54  ;;  %v3271_v52 = vsel %vm938_vm14, %v1022_v61, %v3113_v43 }
 0x471   : > { %v1364_v26 = vsel %vm1363_vm12, %v1362_v47, 0  ;;  %v1020_v3 = vxor.u32 2147483648, %v1019_v20  ;;  %v1126_v56 = vsub.s32 4, %v3159_v50  ;;  %v833_v27 = vadd.f32 %v808_v59, %v3002_v62 }
 0x472   : > { %v1311_v4 = vshll.u32 %v3260_v57, 30  ;;  %v1366_v17 = vand.u32 31, %v1364_v26  ;;  %v1123_v1 = vmul.f32 %v1122_v58, %v1120_v25  ;;  %vm3281_vm13 = vcmp.le.f32.partialorder %v936_v36, 0.7853982 }
 0x473   : > { %v3285_v22 = vsel %vm2291_vm15, 0, %v2290_v16  ;;  %v3290_v43 = vadd.f32 %v833_v27, %v3006_v0  ;;  %v1025_v62 = vsel %vm3281_vm13, 0, %v3271_v52  ;;  %vm1042_vm1 = vcmp.lt.s32.totalorder %v3023_v29, 0 }
 0x474   : > { %v3275_v31 = vsub.s32 %v1308_v21, %v1311_v4  ;;  %v3287_v33 = vsub.s32 32, %v1366_v17  ;;  %v1021_v19 = vsel %vm938_vm14, %v1020_v3, %v1019_v20  ;;  %v1124_v44 = vxor.u32 2147483648, %v1123_v1 }
 0x475   : > { %v3299_v36 = vsel %vm1042_vm1, %v1126_v56, %v3159_v50  ;;  %v901_v40 = vadd.f32 %v3277_v32, %v3004_v63  ;;  %vm3305_vm2 = vcmp.le.f32.partialorder %v1040_v37, 0.7853982  ;;  %v1220_v21 = vsub.s32 4294967266, %v3285_v22 }
 0x476   : > { %v1314_v55 = vsub.s32 0, %v3275_v31  ;;  %v4145_v60 = vand.u32 2147483647, %v3234_v38  ;;  %v902_v10 = vadd.f32 %v3277_v32, %v3010_v2  ;;  %v3314_v50 = vshrl.u32 %v1364_v26, 5 }
 0x477   : > { %v1370_v49 = vshrl.u32 %v4149_v12, %v3287_v33  ;;  %v4179_v51 = vmov 2102212464   ;;  %v1379_v37 = vshrl.u32 %v4141_v34, %v3287_v33  ;;  %v1373_v47 = vshrl.u32 %v4147_v18, %v3287_v33 }
 0x478   : > { %v1378_v24 = vshll.u32 %v4179_v51, %v1366_v17  ;;  %v1376_v6 = vshrl.u32 %v4179_v51, %v3287_v33  ;;  %v1381_v54 = vshll.u32 %v4141_v34, %v1366_v17  ;;  %v4180_v2 = vmov 1326507024  }
 0x479   : > { %v1382_v16 = vshrl.u32 %v4180_v2, %v3287_v33  ;;  %v1024_v26 = vsel %vm3281_vm13, %v3021_v28, %v1021_v19  ;;  %v1369_v42 = vshll.u32 %v4143_v9, %v1366_v17  ;;  %v911_v61 = vfloor.f32 %v901_v40 }
 0x47a   : > { %v1380_v20 = vor.u32 %v1379_v37, %v1378_v24  ;;  %v2293_v25 = vmin.u32 %v1314_v55, %v3275_v31  ;;  %v1372_v4 = vshll.u32 %v4149_v12, %v1366_v17  ;;  %v1375_v58 = vshll.u32 %v4147_v18, %v1366_v17 }
 0x47b   : > { %v1383_v59 = vor.u32 %v1382_v16, %v1381_v54  ;;  %v1125_v3 = vsel %vm1042_vm1, %v1124_v44, %v1123_v1  ;;  %v1221_v56 = vadd.s32 127, %v1220_v21  ;;  %v1359_v27 = vand.u32 8388607, %v4145_v60 }
 0x47c   : > { %v912_v34 = vfloor.f32 %v902_v10  ;;  %v3339_v19 = vor.u32 %v1370_v49, %v1369_v42  ;;  %v3341_v9 = vor.u32 %v1373_v47, %v1372_v4  ;;  %v1377_v24 = vor.u32 %v1376_v6, %v1375_v58 }
 0x47d   : > { %vm1387_vm3 = vcmp.lt.s32.totalorder %v3314_v50, 4  ;;  %2439 = vcosq.f32 %v1024_v26  ;;  %v1200_v17 = vadd.s32 %v3193_v45, %v3187_v35  ;;  %v1216_v55 = vsub.s32 32, %v3285_v22 }
 0x47e   : > { %v1393_v1 = vsel %vm1387_vm3, %v1380_v20, 920167782  ;;  %2441 = vsinq.f32 %v1024_v26  ;;  %v1316_v44 = vclz %v2293_v25  ;;  %v1397_v21 = vsel %vm1387_vm3, %v1383_v59, 1326507024 }
 0x47f   : > { %v921_v49 = vsub.f32 %v901_v40, %v911_v61  ;;  %v1128_v37 = vsel %vm3305_vm2, %v3023_v29, %v1125_v3  ;;  %v1222_v47 = vshll.u32 %v1221_v56, 23  ;;  %vm1384_vm4 = vcmp.lt.s32.totalorder %v3314_v50, 1 }
 0x480   : > { %vm1386_vm5 = vcmp.lt.s32.totalorder %v3314_v50, 3  ;;  %v1360_v35 = vor.u32 8388608, %v1359_v27  ;;  %v1392_v45 = vsel %vm1384_vm4, %v3339_v19, %v3341_v9  ;;  %v922_v54 = vsub.f32 %v902_v10, %v912_v34 }
 0x481   : > { %v1394_v6 = vsel %vm1386_vm5, %v1377_v24, %v1393_v1  ;;  %v1218_v40 = vshrl.u32 %v1200_v17, %v1216_v55  ;;  %v1396_v16 = vsel %vm1384_vm4, %v3341_v9, %v1377_v24  ;;  %v1398_v26 = vsel %vm1386_vm5, %v1380_v20, %v1397_v21 }
 0x482   : > { %v903_v42 = vadd.f32 %v3277_v32, %v3014_v8  ;;  %2443 = vcosq.f32 %v1128_v37  ;;  %v2294_v61 = vadd.s32 4294967294, %v1316_v44  ;;  %vm1385_vm6 = vcmp.lt.s32.totalorder %v3314_v50, 2 }
 0x483   : > { %v3370_v25 = vmul.f32 6.2831855, %v921_v49  ;;  %v1217_v34 = vshll.u32 %v3224_v46, %v3285_v22  ;;  %v1223_v10 = vor.u32 4788187, %v1222_v47  ;;  %v1395_v4 = vsel %vm1385_vm6, %v1392_v45, %v1394_v6 }
 0x484   : > { %v3378_v58 = vadd.f32 %v3290_v43, %v3004_v63  ;;  %v1399_v8 = vsel %vm1385_vm6, %v1396_v16, %v1398_v26  ;;  %v3382_v20 = vshll.u32 %v1360_v35, 8  ;;  %v3384_v59 = vmul.f32 6.2831855, %v922_v54 }
 0x485   : > { %v1459_v3 = vand.u32 2139095040, %v3370_v25  ;;  %2445 = vsinq.f32 %v1128_v37  ;;  %v1219_v56 = vor.u32 %v1218_v40, %v1217_v34  ;;  %v1230_v46 = vsub.s32 4, %v3213_v39 }
 0x486   : > { %v913_v22 = vfloor.f32 %v903_v42  ;;  %vm2295_vm7 = vcmp.lt.s32.totalorder %v2294_v61, 0  ;;  %v3389_v27 = vmul.u32.u64.low %v3382_v20, %v1395_v4  ;;  %v3390_v17 = vmul.u32.u64.high %v3382_v20, %v1395_v4, %v3389_v27 }
 0x487   : > { %v1460_v63 = vshrl.u32 %v1459_v3, 23  ;;  %v1029_v43 = vadd.s32 3, %v1025_v62  ;;  %v1224_v55 = vand.u32 2147483647, %v1223_v10  ;;  %v1129_v21 = vsel %vm3305_vm2, 0, %v3299_v36 }
 0x488   : > { %4181 = vst [vmem:[#allocation13_spill] sm:$0xff] %v3389_v27  ;;  %v3398_v1 = vmul.u32.u64.low %v3382_v20, %v1399_v8  ;;  %v3399_v44 = vmul.u32.u64.high %v3382_v20, %v1399_v8, %v3398_v1  ;;  %vm1146_vm8 = vcmp.lt.s32.totalorder %v3025_v30, 0  ;;  %v1563_v37 = vand.u32 2139095040, %v3384_v59 }
 0x489   : > { %v2300_v49 = vadd.s32 4294967169, %v1460_v63  ;;  %v1226_v47 = vcvt.s32.f32 %v1219_v56  ;;  %v1231_v52 = vsel %vm1146_vm8, %v1230_v46, %v3213_v39  ;;  %v3409_v53 = vsel %vm2295_vm7, 0, %v2294_v61 }
 0x48a   : > { %4182 = vst [vmem:[#allocation14_spill] sm:$0xff] %v3399_v44  ;;  %v904_v62 = vadd.f32 %v3277_v32, %v3017_v5  ;;  %v2440_v35 = vpop.eup %2439  ;;  %v4183_v45 = vand.u32 2147483647, %v3025_v30  ;;  %v1389_v0 = vsel %vm1387_vm3, %v1377_v24, 2102212464  ;;  %v923_v6 = vsub.f32 %v903_v42, %v913_v22 }
 0x48b   : > { %v1466_v54 = vadd.s32 1, %v2300_v49  ;;  %v2442_v40 = vpop.eup %2441  ;;  %v1030_v16 = vand.u32 3, %v1029_v43  ;;  %v1133_v39 = vadd.s32 3, %v1129_v21  ;;  %v1227_v26 = vmul.f32 %v1226_v47, %v1224_v55 }
 0x48c   : > { %vm3415_vm9 = vcmp.le.f32.partialorder %v4183_v45, 0.7853982  ;;  %v4186_v61 = vmov 683565275   ;;  %v1324_v10 = vsub.s32 4294967266, %v3409_v53  ;;  %v1564_v4 = vshrl.u32 %v1563_v37, 23 }
 0x48d   : > { %v1368_v34 = vshrl.u32 %v4186_v61, %v3287_v33  ;;  %v1233_v5 = vsel %vm3415_vm9, 0, %v1231_v52  ;;  %vm1467_vm10 = vcmp.gt.s32.totalorder %v1466_v54, 0  ;;  %v1390_v42 = vsel %vm1386_vm5, %v3341_v9, %v1389_v0 }
 0x48e   : > { %v914_v8 = vfloor.f32 %v904_v62  ;;  %v1468_v3 = vsel %vm1467_vm10, %v1466_v54, 0  ;;  %v1033_v56 = vxor.u32 2147483648, %v2442_v40  ;;  %v1036_v46 = vxor.u32 2147483648, %v2440_v35 }
 0x48f   : > { %v1388_v24 = vsel %vm1384_vm4, %v1368_v34, %v3339_v19  ;;  %v1410_v33 = vadd.s32 1, %v3390_v17  ;;  %v3433_v22 = vmul.f32 6.2831855, %v923_v6  ;;  %v3435_v63 = vpop.eup %2443  ;;  %v3437_v43 = vand.u32 3, %v1133_v39 }
 0x490   : > { %v1228_v55 = vxor.u32 2147483648, %v1227_v26  ;;  %vm1409_vm11 = vc.u32 %v3399_v44, %v3389_v27  ;;  %v1470_v19 = vand.u32 31, %v1468_v3  ;;  %v1237_v1 = vadd.s32 3, %v1233_v5 }
 0x491   : > { %v1325_v21 = vadd.s32 127, %v1324_v10  ;;  %v1391_v9 = vsel %vm1385_vm6, %v1388_v24, %v1390_v42  ;;  %v2304_v49 = vadd.s32 4294967169, %v1564_v4  ;;  %vm1031_vm12 = vcmp.lt.s32.totalorder %v1030_v16, 2 }
 0x492   : > { %vm1032_vm14 = vcmp.eq.s32.totalorder %v1030_v16, 0  ;;  %vm1035_vm15 = vcmp.eq.s32.totalorder %v1030_v16, 2  ;;  %v924_v37 = vsub.f32 %v904_v62, %v914_v8  ;;  %v3443_v47 = vpop.eup %2445  ;;  %v1411_v0 = vsel %vm1409_vm11, %v1410_v33, %v3390_v17 }
 0x493   : > { %v1034_v52 = vsel %vm1032_vm14, %v2440_v35, %v1033_v56  ;;  %v1037_v45 = vsel %vm1035_vm15, %v1036_v46, %v2442_v40  ;;  %v1667_v6 = vand.u32 2139095040, %v3433_v22  ;;  %v1229_v54 = vsel %vm1146_vm8, %v1228_v55, %v1227_v26 }
 0x494   : > { %v1320_v39 = vsub.s32 32, %v3409_v53  ;;  %v1407_v50 = vmul.u32 %v3382_v20, %v1391_v9  ;;  %v1471_v34 = vsub.s32 32, %v1470_v19  ;;  %vm1139_vm13 = vcmp.eq.s32.totalorder %v3437_v43, 2 }
 0x495   : > { %v3452_v5 = vand.u32 3, %v1237_v1  ;;  %v1304_v62 = vadd.s32 %v3238_v48, %v3244_v23  ;;  %v1326_v35 = vshll.u32 %v1325_v21, 23  ;;  %v1570_v40 = vadd.s32 1, %v2304_v49 }
 0x496   : > { %v3457_v17 = vsel %vm1031_vm12, %v1034_v52, %v1037_v45  ;;  %v1140_v10 = vxor.u32 2147483648, %v3435_v63  ;;  %v3460_v26 = vadd.s32 %v1411_v0, %v1407_v50  ;;  %v3462_v4 = vmul.f32 6.2831855, %v924_v37 }
 0x497   : > { %v1137_v20 = vxor.u32 2147483648, %v3443_v47  ;;  %v1232_v24 = vsel %vm3415_vm9, %v3025_v30, %v1229_v54  ;;  %v1668_v42 = vshrl.u32 %v1667_v6, 23  ;;  %v4146_v48 = vand.u32 2147483647, %v3370_v25 }
 0x498   : > { %v1321_v23 = vshll.u32 %v3275_v31, %v3409_v53  ;;  %v1322_v16 = vshrl.u32 %v1304_v62, %v1320_v39  ;;  %v1474_v8 = vshrl.u32 %v4149_v12, %v1471_v34  ;;  %v1477_v56 = vshrl.u32 %v4147_v18, %v1471_v34 }
 0x499   : > { %v1327_v46 = vor.u32 4788187, %v1326_v35  ;;  %vm1571_vm1 = vcmp.gt.s32.totalorder %v1570_v40, 0  ;;  %v1480_v33 = vshrl.u32 %v4179_v51, %v1471_v34  ;;  %v4187_v55 = vmov 920167782  }
 0x49a   : > { %v1483_v1 = vshrl.u32 %v4187_v55, %v1471_v34  ;;  %v1413_v36 = vadd.s32 536870912, %v3460_v26  ;;  %v1771_v21 = vand.u32 2139095040, %v3462_v4  ;;  %v1473_v9 = vshll.u32 %v4186_v61, %v1470_v19 }
 0x49b   : > { %v1476_v49 = vshll.u32 %v4149_v12, %v1470_v19  ;;  %v2308_v31 = vadd.s32 4294967169, %v1668_v42  ;;  %v1463_v53 = vand.u32 8388607, %v4146_v48  ;;  %v1479_v37 = vshll.u32 %v4147_v18, %v1470_v19 }
 0x49c   : > { %v1482_v52 = vshll.u32 %v4179_v51, %v1470_v19  ;;  %v1469_v45 = vshrl.u32 %v1468_v3, 5  ;;  %v1572_v0 = vsel %vm1571_vm1, %v1570_v40, 0  ;;  %v1475_v6 = vor.u32 %v1474_v8, %v1473_v9 }
 0x49d   : > { %v1478_v54 = vor.u32 %v1477_v56, %v1476_v49  ;;  %vm1136_vm2 = vcmp.eq.s32.totalorder %v3437_v43, 0  ;;  %v1481_v39 = vor.u32 %v1480_v33, %v1479_v37  ;;  %v1485_v62 = vshll.u32 %v4187_v55, %v1470_v19 }
 0x49e   : > { %v1484_v50 = vor.u32 %v1483_v1, %v1482_v52  ;;  %v1486_v35 = vshrl.u32 %v4180_v2, %v1471_v34  ;;  %v3489_v42 = vsel %vm1139_vm13, %v1140_v10, %v3443_v47  ;;  %2447 = vcosq.f32 %v1232_v24 }
 0x49f   : > { %v1323_v60 = vor.u32 %v1322_v16, %v1321_v23  ;;  %v1328_v48 = vand.u32 2147483647, %v1327_v46  ;;  %v1574_v3 = vand.u32 31, %v1572_v0  ;;  %v1772_v40 = vshrl.u32 %v1771_v21, 23 }
 0x4a0   : > { %v1464_v8 = vor.u32 8388608, %v1463_v53  ;;  %v1487_v56 = vor.u32 %v1486_v35, %v1485_v62  ;;  %v3491_v9 = vshrl.u32 %v1413_v36, 30  ;;  %v1674_v33 = vadd.s32 1, %v2308_v31 }
 0x4a1   : > { %vm1488_vm3 = vcmp.lt.s32.totalorder %v1469_v45, 1  ;;  %vm1491_vm4 = vcmp.lt.s32.totalorder %v1469_v45, 4  ;;  %vm1490_vm5 = vcmp.lt.s32.totalorder %v1469_v45, 3  ;;  %v1472_v37 = vshrl.u32 %v4186_v61, %v1471_v34 }
 0x4a2   : > { %4188 = vst [vmem:[#allocation15_spill] sm:$0xff] %v3491_v9  ;;  %v1493_v19 = vsel %vm1491_vm4, %v1481_v39, 2102212464  ;;  %v1496_v1 = vsel %vm1488_vm3, %v1475_v6, %v1478_v54  ;;  %v1497_v49 = vsel %vm1491_vm4, %v1484_v50, 920167782  ;;  %vm1489_vm6 = vcmp.lt.s32.totalorder %v1469_v45, 2 }
 0x4a3   : > { %v1498_v47 = vsel %vm1490_vm5, %v1481_v39, %v1497_v49  ;;  %v1500_v10 = vsel %vm1488_vm3, %v1478_v54, %v1481_v39  ;;  %v1575_v23 = vsub.s32 32, %v1574_v3  ;;  %v1501_v46 = vsel %vm1491_vm4, %v1487_v56, 1326507024 }
 0x4a4   : > { %v1499_v16 = vsel %vm1489_vm6, %v1496_v1, %v1498_v47  ;;  %v1504_v21 = vshll.u32 %v1464_v8, 8  ;;  %v1492_v53 = vsel %vm1488_vm3, %v1472_v37, %v1475_v6  ;;  %v1494_v36 = vsel %vm1490_vm5, %v1478_v54, %v1493_v19 }
 0x4a5   : > { %v1502_v52 = vsel %vm1490_vm5, %v1484_v50, %v1501_v46  ;;  %v4151_v31 = vand.u32 2147483647, %v3384_v59  ;;  %v1330_v62 = vcvt.s32.f32 %v1323_v60  ;;  %v3504_v34 = vsel %vm1136_vm2, %v3435_v63, %v1137_v20 }
 0x4a6   : > { %v1503_v35 = vsel %vm1489_vm6, %v1500_v10, %v1502_v52  ;;  %v3497_v18 = vmul.u32.u64.low %v1504_v21, %v1499_v16  ;;  %v3498_v12 = vmul.u32.u64.high %v1504_v21, %v1499_v16, %v3497_v18  ;;  %2449 = vsinq.f32 %v1232_v24  ;;  %v3530_v52 = vpop.permute.xlu0 %1980 }
 0x4a7   : > { %v3506_v39 = vmul.u32.u64.low %v1504_v21, %v1503_v35  ;;  %v3507_v8 = vmul.u32.u64.high %v1504_v21, %v1503_v35, %v3506_v39  ;;  %v3509_v6 = vmul.f32 %v1330_v62, %v1328_v48  ;;  %v2312_v54 = vadd.s32 4294967169, %v1772_v40 }
 0x4a8   : > { %v1495_v60 = vsel %vm1489_vm6, %v1492_v53, %v1494_v36  ;;  %v4189_v50 = vmov 2475754826   ;;  %v1415_v19 = vshll.u32 %v3491_v9, 30  ;;  %vm1675_vm7 = vcmp.gt.s32.totalorder %v1674_v33, 0 }
 0x4a9   : > { %v1578_v56 = vshrl.u32 %v4189_v50, %v1575_v23  ;;  %v1567_v1 = vand.u32 8388607, %v4151_v31  ;;  %v4190_v49 = vmov 2131351028   ;;  %v1514_v20 = vadd.s32 1, %v3498_v12 }
 0x4aa   : > { %v1581_v63 = vshrl.u32 %v4190_v49, %v1575_v23  ;;  %v1577_v24 = vshll.u32 %v4186_v61, %v1574_v3  ;;  %v1580_v48 = vshll.u32 %v4189_v50, %v1574_v3  ;;  %v1584_v40 = vshrl.u32 %v4179_v51, %v1575_v23 }
 0x4ab   : > { %v1573_v45 = vshrl.u32 %v1572_v0, 5  ;;  %v1511_v37 = vmul.u32 %v1504_v21, %v1495_v60  ;;  %vm1513_vm8 = vc.u32 %v3507_v8, %v3497_v18  ;;  %v1583_v47 = vshll.u32 %v4190_v49, %v1574_v3  ;;  %v3524_v10 = vpop.eup %2447 }
 0x4ac   : > { %v3526_v16 = vadd.s32 1, %v2312_v54  ;;  %v1515_v46 = vsel %vm1513_vm8, %v1514_v20, %v3498_v12  ;;  %v1579_v53 = vor.u32 %v1578_v56, %v1577_v24  ;;  %v1582_v36 = vor.u32 %v1581_v63, %v1580_v48 }
 0x4ad   : > { %vm1135_vm9 = vcmp.lt.s32.totalorder %v3437_v43, 2  ;;  %v1516_v62 = vadd.s32 %v1515_v46, %v1511_v37  ;;  %v1585_v0 = vor.u32 %v1584_v40, %v1583_v47  ;;  %v1586_v21 = vshll.u32 %v4179_v51, %v1574_v3 }
 0x4ae   : > { %v1587_v35 = vshrl.u32 %v4187_v55, %v1575_v23  ;;  %v3535_v39 = vsel %vm1675_vm7, %v1674_v33, 0  ;;  %v1568_v60 = vor.u32 8388608, %v1567_v1  ;;  %v1589_v54 = vshll.u32 %v4187_v55, %v1574_v3 }
 0x4af   : > { %v1590_v12 = vshrl.u32 %v4180_v2, %v1575_v23  ;;  %vm1028_vm10 = vweird.f32 %v3021_v28  ;;  %v1517_v56 = vadd.s32 536870912, %v1516_v62  ;;  %v1576_v63 = vshrl.u32 %v4186_v61, %v1575_v23  ;;  %v2079_v23 = vpop.permute.xlu0 %2078 }
 0x4b0   : > { %v1588_v20 = vor.u32 %v1587_v35, %v1586_v21  ;;  %vm1592_vm11 = vcmp.lt.s32.totalorder %v1573_v45, 1  ;;  %vm1132_vm12 = vweird.f32 %v3023_v29  ;;  %vm1594_vm14 = vcmp.lt.s32.totalorder %v1573_v45, 3 }
 0x4b1   : > { %v1591_v24 = vor.u32 %v1590_v12, %v1589_v54  ;;  %vm1595_vm15 = vcmp.lt.s32.totalorder %v1573_v45, 4  ;;  %v1600_v33 = vsel %vm1592_vm11, %v1579_v53, %v1582_v36  ;;  %v1518_v48 = vshrl.u32 %v1517_v56, 30 }
 0x4b2   : > { %v1597_v1 = vsel %vm1595_vm15, %v1585_v0, 2102212464  ;;  %v1601_v40 = vsel %vm1595_vm15, %v1588_v20, 920167782  ;;  %v1604_v3 = vsel %vm1592_vm11, %v1582_v36, %v1585_v0  ;;  %vm1593_vm13 = vcmp.lt.s32.totalorder %v1573_v45, 2 }
 0x4b3   : > { %v1602_v37 = vsel %vm1594_vm14, %v1585_v0, %v1601_v40  ;;  %v1605_v47 = vsel %vm1595_vm15, %v1591_v24, 1326507024  ;;  %v1608_v46 = vshll.u32 %v1568_v60, 8  ;;  %vm1240_vm1 = vcmp.eq.s32.totalorder %v3452_v5, 0  ;;  %v2450_v56 = vpop.eup %2449 }
 0x4b4   : > { %vm1250_vm2 = vcmp.lt.s32.totalorder %v3034_v41, 0  ;;  %v1519_v21 = vshll.u32 %v1518_v48, 30  ;;  %v1596_v35 = vsel %vm1592_vm11, %v1576_v63, %v1579_v53  ;;  %v1603_v54 = vsel %vm1593_vm13, %v1600_v33, %v1602_v37 }
 0x4b5   : > { %v1606_v12 = vsel %vm1594_vm14, %v1588_v20, %v1605_v47  ;;  %v1598_v31 = vsel %vm1594_vm14, %v1582_v36, %v1597_v1  ;;  %v3552_v0 = vmul.u32.u64.low %v1608_v46, %v1603_v54  ;;  %v3553_v24 = vmul.u32.u64.high %v1608_v46, %v1603_v54, %v3552_v0 }
 0x4b6   : > { %v1607_v9 = vsel %vm1593_vm13, %v1604_v3, %v1606_v12  ;;  %v3557_v60 = vsub.s32 %v3460_v26, %v1415_v19  ;;  %v3559_v40 = vsub.s32 %v1516_v62, %v1519_v21  ;;  %v1142_v63 = vsel %vm1135_vm9, %v3504_v34, %v3489_v42 }
 0x4b7   : > { %v3561_v13 = vmul.u32.u64.low %v1608_v46, %v1607_v9  ;;  %v3562_v53 = vmul.u32.u64.high %v1608_v46, %v1607_v9, %v3561_v13  ;;  %vm1243_vm3 = vcmp.eq.s32.totalorder %v3452_v5, 2  ;;  %v1244_v36 = vxor.u32 2147483648, %v3524_v10 }
 0x4b8   : > { %4191 = vst [vmem:[#allocation16_spill] sm:$0xff] %v3557_v60  ;;  %v3571_v20 = vrot.slane %v2079_v23, %v2713_v15  ;;  %v1678_v26 = vand.u32 31, %v3535_v39  ;;  %vm1779_vm4 = vcmp.gt.s32.totalorder %v3526_v16, 0  ;;  %v1522_v19 = vsub.s32 0, %v3559_v40 }
 0x4b9   : > { %v1599_v13 = vsel %vm1593_vm13, %v1596_v35, %v1598_v31  ;;  %v3580_v43 = vsel %vm1028_vm10, nan, %v3457_v17  ;;  %v1241_v42 = vxor.u32 2147483648, %v2450_v56  ;;  %v1332_v9 = vxor.u32 2147483648, %v3509_v6 }
 0x4ba   : > { %4192 = vst [vmem:[#allocation17_spill] sm:$0xff] %v3571_v20  ;;  %v1618_v34 = vadd.s32 1, %v3553_v24  ;;  %v3586_v62 = vsel %vm1132_vm12, nan, %v1142_v63  ;;  %v1418_v33 = vsub.s32 0, %v3557_v60  ;;  %v2301_v1 = vmin.u32 %v1522_v19, %v3559_v40 }
 0x4bb   : > { %vm1617_vm5 = vc.u32 %v3562_v53, %v3552_v0  ;;  %v1780_v28 = vsel %vm1779_vm4, %v3526_v16, 0  ;;  %v1542_v17 = vsub.s32 4, %v1518_v48  ;;  %v1615_v31 = vmul.u32 %v1608_v46, %v1599_v13 }
 0x4bc   : > { %v1619_v45 = vsel %vm1617_vm5, %v1618_v34, %v3553_v24  ;;  %v3596_v3 = vsel %vm1243_vm3, %v1244_v36, %v2450_v56  ;;  %v1679_v29 = vsub.s32 32, %v1678_v26  ;;  %v1524_v37 = vclz %v2301_v1 }
 0x4bd   : > { %v4154_v47 = vand.u32 2147483647, %v3433_v22  ;;  %v3602_v23 = vsel %vm1240_vm1, %v3524_v10, %v1241_v42  ;;  %v3607_v16 = vsel %vm1250_vm2, %v1332_v9, %v3509_v6  ;;  %v3610_v46 = vshrl.u32 %v3535_v39, 5 }
 0x4be   : > { %v1620_v21 = vadd.s32 %v1619_v45, %v1615_v31  ;;  %v3613_v35 = vmin.u32 %v1418_v33, %v3557_v60  ;;  %v3615_v54 = vshrl.u32 %v1780_v28, 5  ;;  %v4193_v12 = vand.u32 2147483647, %v3370_v25 }
 0x4bf   : > { %vm1458_vm7 = vcmp.lt.s32.totalorder %v3370_v25, 0  ;;  %v2302_v10 = vadd.s32 4294967294, %v1524_v37  ;;  %v3624_v6 = vand.u32 31, %v1780_v28  ;;  %v1512_v39 = vadd.s32 %v3497_v18, %v3507_v8 }
 0x4c0   : > { %vm3619_vm6 = vcmp.le.f32.partialorder %v4193_v12, 0.7853982  ;;  %v1543_v24 = vsel %vm1458_vm7, %v1542_v17, %v1518_v48  ;;  %v1621_v63 = vadd.s32 536870912, %v1620_v21  ;;  %v1671_v36 = vand.u32 8388607, %v4154_v47 }
 0x4c1   : > { %vm2303_vm8 = vcmp.lt.s32.totalorder %v2302_v10, 0  ;;  %v1681_v19 = vshll.u32 %v4186_v61, %v1678_v26  ;;  %v1682_v13 = vshrl.u32 %v4189_v50, %v1679_v29  ;;  %v1685_v34 = vshrl.u32 %v4190_v49, %v1679_v29 }
 0x4c2   : > { %v1527_v42 = vsel %vm2303_vm8, 0, %v2302_v10  ;;  %v3634_v9 = vshrl.u32 %v1621_v63, 30  ;;  %v1691_v33 = vshrl.u32 %v4187_v55, %v1679_v29  ;;  %v1684_v48 = vshll.u32 %v4189_v50, %v1678_v26 }
 0x4c3   : > { %v1528_v18 = vsub.s32 32, %v1527_v42  ;;  %v1532_v8 = vsub.s32 4294967266, %v1527_v42  ;;  %v1688_v1 = vshrl.u32 %v4179_v51, %v1679_v29  ;;  %v1687_v17 = vshll.u32 %v4190_v49, %v1678_v26 }
 0x4c4   : > { %v1623_v28 = vshll.u32 %v3634_v9, 30  ;;  %v1690_v31 = vshll.u32 %v4179_v51, %v1678_v26  ;;  %v1694_v45 = vshrl.u32 %v4180_v2, %v1679_v29  ;;  %v1529_v37 = vshll.u32 %v3559_v40, %v1527_v42 }
 0x4c5   : > { %v1530_v12 = vshrl.u32 %v1512_v39, %v1528_v18  ;;  %v1533_v10 = vadd.s32 127, %v1532_v8  ;;  %v1693_v63 = vshll.u32 %v4187_v55, %v1678_v26  ;;  %v1683_v7 = vor.u32 %v1682_v13, %v1681_v19 }
 0x4c6   : > { %v3646_v47 = vsub.s32 %v1620_v21, %v1623_v28  ;;  %v1686_v38 = vor.u32 %v1685_v34, %v1684_v48  ;;  %v1692_v60 = vor.u32 %v1691_v33, %v1690_v31  ;;  %v1689_v14 = vor.u32 %v1688_v1, %v1687_v17 }
 0x4c7   : > { %v1531_v27 = vor.u32 %v1530_v12, %v1529_v37  ;;  %v1534_v44 = vshll.u32 %v1533_v10, 23  ;;  %v1695_v20 = vor.u32 %v1694_v45, %v1693_v63  ;;  %v1420_v11 = vclz %v3613_v35 }
 0x4c8   : > { %v1545_v15 = vsel %vm3619_vm6, 0, %v1543_v24  ;;  %v1626_v40 = vsub.s32 0, %v3646_v47  ;;  %v1672_v39 = vor.u32 8388608, %v1671_v36  ;;  %vm1696_vm9 = vcmp.lt.s32.totalorder %v3610_v46, 1 }
 0x4c9   : > { %v1535_v42 = vor.u32 4788187, %v1534_v44  ;;  %vm1698_vm10 = vcmp.lt.s32.totalorder %v3610_v46, 3  ;;  %vm1699_vm11 = vcmp.lt.s32.totalorder %v3610_v46, 4  ;;  %v1538_v26 = vcvt.s32.f32 %v1531_v27 }
 0x4ca   : > { %v2305_v21 = vmin.u32 %v1626_v40, %v3646_v47  ;;  %v1704_v19 = vsel %vm1696_vm9, %v1683_v7, %v1686_v38  ;;  %v1705_v13 = vsel %vm1699_vm11, %v1692_v60, 920167782  ;;  %v1708_v44 = vsel %vm1696_vm9, %v1686_v38, %v1689_v14 }
 0x4cb   : > { %v1536_v34 = vand.u32 2147483647, %v1535_v42  ;;  %v1706_v24 = vsel %vm1698_vm10, %v1689_v14, %v1705_v13  ;;  %v1709_v36 = vsel %vm1699_vm11, %v1695_v20, 1326507024  ;;  %v1680_v18 = vshrl.u32 %v4186_v61, %v1679_v29 }
 0x4cc   : > { %v1628_v33 = vclz %v2305_v21  ;;  %vm1697_vm12 = vcmp.lt.s32.totalorder %v3610_v46, 2  ;;  %v1701_v27 = vsel %vm1699_vm11, %v1689_v14, 2102212464  ;;  %v1710_v1 = vsel %vm1698_vm10, %v1692_v60, %v1709_v36 }
 0x4cd   : > { %v1539_v8 = vmul.f32 %v1538_v26, %v1536_v34  ;;  %v1707_v48 = vsel %vm1697_vm12, %v1704_v19, %v1706_v24  ;;  %v1712_v28 = vshll.u32 %v1672_v39, 8  ;;  %v3669_v17 = vsub.s32 32, %v3624_v6 }
 0x4ce   : > { %v2306_v31 = vadd.s32 4294967294, %v1628_v33  ;;  %v1700_v20 = vsel %vm1696_vm9, %v1680_v18, %v1683_v7  ;;  %v1711_v29 = vsel %vm1697_vm12, %v1708_v44, %v1710_v1  ;;  %v1702_v14 = vsel %vm1698_vm10, %v1686_v38, %v1701_v27 }
 0x4cf   : > { %v1540_v45 = vxor.u32 2147483648, %v1539_v8  ;;  %v3677_v37 = vmul.u32.u64.low %v1712_v28, %v1711_v29  ;;  %v3678_v12 = vmul.u32.u64.high %v1712_v28, %v1711_v29, %v3677_v37  ;;  %v1549_v10 = vadd.s32 3, %v1545_v15 }
 0x4d0   : > { %vm2307_vm14 = vcmp.lt.s32.totalorder %v2306_v31, 0  ;;  %v3680_v60 = vmul.u32.u64.low %v1712_v28, %v1707_v48  ;;  %v3681_v63 = vmul.u32.u64.high %v1712_v28, %v1707_v48, %v3680_v60  ;;  %v1616_v7 = vadd.s32 %v3552_v0, %v3562_v53 }
 0x4d1   : > { %v1541_v40 = vsel %vm1458_vm7, %v1540_v45, %v1539_v8  ;;  %v1631_v39 = vsel %vm2307_vm14, 0, %v2306_v31  ;;  %v1646_v42 = vsub.s32 4, %v3634_v9  ;;  %v1703_v21 = vsel %vm1697_vm12, %v1700_v20, %v1702_v14 }
 0x4d2   : > { %v1544_v38 = vsel %vm3619_vm6, %v3370_v25, %v1541_v40  ;;  %v1632_v26 = vsub.s32 32, %v1631_v39  ;;  %v1636_v15 = vsub.s32 4294967266, %v1631_v39  ;;  %v1633_v19 = vshll.u32 %v3646_v47, %v1631_v39 }
 0x4d3   : > { %2451 = vcosq.f32 %v1544_v38  ;;  %vm1721_vm15 = vc.u32 %v3678_v12, %v3680_v60  ;;  %v1768_v0 = vand.u32 2147483647, %v3462_v4  ;;  %v1722_v34 = vadd.s32 1, %v3681_v63 }
 0x4d4   : > { %2453 = vsinq.f32 %v1544_v38  ;;  %v1634_v53 = vshrl.u32 %v1616_v7, %v1632_v26  ;;  %v1637_v13 = vadd.s32 127, %v1636_v15  ;;  %v3699_v56 = vand.u32 3, %v1549_v10  ;;  %v3740_v15 = vpop.permute.xlu1 %1985 }
 0x4d5   : > { %v4196_v24 = vand.u32 2147483647, %v3384_v59  ;;  %vm1562_vm1 = vcmp.lt.s32.totalorder %v3384_v59, 0  ;;  %v1719_v47 = vmul.u32 %v1712_v28, %v1703_v21  ;;  %v1723_v18 = vsel %vm1721_vm15, %v1722_v34, %v3681_v63 }
 0x4d6   : > { %v1635_v44 = vor.u32 %v1634_v53, %v1633_v19  ;;  %v1638_v36 = vshll.u32 %v1637_v13, 23  ;;  %v3711_v33 = vsel %vm1562_vm1, %v1646_v42, %v3634_v9  ;;  %v1775_v8 = vand.u32 8388607, %v1768_v0 }
 0x4d7   : > { %vm3703_vm13 = vcmp.le.f32.partialorder %v4196_v24, 0.7853982  ;;  %v1724_v27 = vadd.s32 %v1723_v18, %v1719_v47  ;;  %v1789_v48 = vshrl.u32 %v4190_v49, %v3669_v17  ;;  %v1792_v1 = vshrl.u32 %v4179_v51, %v3669_v17 }
 0x4d8   : > { %v1639_v28 = vor.u32 4788187, %v1638_v36  ;;  %v1785_v31 = vshll.u32 %v4186_v61, %v3624_v6  ;;  %v1786_v9 = vshrl.u32 %v4189_v50, %v3669_v17  ;;  %v1788_v20 = vshll.u32 %v4189_v50, %v3624_v6 }
 0x4d9   : > { %v1725_v29 = vadd.s32 536870912, %v1724_v27  ;;  %v1791_v45 = vshll.u32 %v4190_v49, %v3624_v6  ;;  %v1794_v14 = vshll.u32 %v4179_v51, %v3624_v6  ;;  %v1795_v37 = vshrl.u32 %v4187_v55, %v3669_v17 }
 0x4da   : > { %vm1555_vm3 = vcmp.eq.s32.totalorder %v3699_v56, 2  ;;  %v1640_v10 = vand.u32 2147483647, %v1639_v28  ;;  %v1642_v63 = vcvt.s32.f32 %v1635_v44  ;;  %v1797_v40 = vshll.u32 %v4187_v55, %v3624_v6 }
 0x4db   : > { %v1798_v7 = vshrl.u32 %v4180_v2, %v3669_v17  ;;  %vm1552_vm4 = vcmp.eq.s32.totalorder %v3699_v56, 0  ;;  %v3738_v39 = vshrl.u32 %v1725_v29, 30  ;;  %v1790_v42 = vor.u32 %v1789_v48, %v1788_v20  ;;  %v2148_v48 = vpop.permute.xlu1 %2147 }
 0x4dc   : > { %v1793_v38 = vor.u32 %v1792_v1, %v1791_v45  ;;  %v1796_v26 = vor.u32 %v1795_v37, %v1794_v14  ;;  %vm1551_vm5 = vcmp.lt.s32.totalorder %v3699_v56, 2  ;;  %v1643_v21 = vmul.f32 %v1642_v63, %v1640_v10  ;;  %2154 = vst.msk [vmem:[#allocation2] sm:$0xff] %vm339_vm0, %v2148_v48 }
 0x4dd   : > { %v1649_v19 = vsel %vm3703_vm13, 0, %v3711_v33  ;;  %v1787_v6 = vor.u32 %v1786_v9, %v1785_v31  ;;  %v1799_v53 = vor.u32 %v1798_v7, %v1797_v40  ;;  %vm1548_vm6 = vweird.f32 %v3370_v25 }
 0x4de   : > { %v1727_v13 = vshll.u32 %v3738_v39, 30  ;;  %v1776_v34 = vor.u32 8388608, %v1775_v8  ;;  %v1784_v24 = vshrl.u32 %v4186_v61, %v3669_v17  ;;  %vm1803_vm7 = vcmp.lt.s32.totalorder %v3615_v54, 4 }
 0x4df   : > { %vm1239_vm8 = vcmp.lt.s32.totalorder %v3452_v5, 2  ;;  %v1644_v47 = vxor.u32 2147483648, %v1643_v21  ;;  %vm1800_vm9 = vcmp.lt.s32.totalorder %v3615_v54, 1  ;;  %vm1801_vm10 = vcmp.lt.s32.totalorder %v3615_v54, 2 }
 0x4e0   : > { %v1809_v44 = vsel %vm1803_vm7, %v1796_v26, 920167782  ;;  %v4199_v36 = vand.u32 2147483647, %v3034_v41  ;;  %v3762_v18 = vsub.s32 %v1724_v27, %v1727_v13  ;;  %vm1802_vm12 = vcmp.lt.s32.totalorder %v3615_v54, 3  ;;  %v2452_v1 = vpop.eup %2451 }
 0x4e1   : > { %v1812_v17 = vsel %vm1800_vm9, %v1790_v42, %v1793_v38  ;;  %v1813_v8 = vsel %vm1803_vm7, %v1799_v53, 1326507024  ;;  %v1645_v28 = vsel %vm1562_vm1, %v1644_v47, %v1643_v21  ;;  %v1808_v31 = vsel %vm1800_vm9, %v1787_v6, %v1790_v42  ;;  %v2454_v20 = vpop.eup %2453 }
 0x4e2   : > { %vm3758_vm11 = vcmp.le.f32.partialorder %v4199_v36, 0.7853982  ;;  %v1810_v27 = vsel %vm1802_vm12, %v1793_v38, %v1809_v44  ;;  %v1814_v9 = vsel %vm1802_vm12, %v1796_v26, %v1813_v8  ;;  %v1556_v29 = vxor.u32 2147483648, %v2452_v1 }
 0x4e3   : > { %v1648_v45 = vsel %vm3703_vm13, %v3384_v59, %v1645_v28  ;;  %v1730_v14 = vsub.s32 0, %v3762_v18  ;;  %v1805_v37 = vsel %vm1803_vm7, %v1793_v38, 2102212464  ;;  %v1553_v10 = vxor.u32 2147483648, %v2454_v20 }
 0x4e4   : > { %2455 = vcosq.f32 %v1648_v45  ;;  %v1815_v63 = vsel %vm1801_vm10, %v1812_v17, %v1814_v9  ;;  %v1816_v40 = vshll.u32 %v1776_v34, 8  ;;  %v1557_v7 = vsel %vm1555_vm3, %v1556_v29, %v2454_v20 }
 0x4e5   : > { %2457 = vsinq.f32 %v1648_v45  ;;  %v2309_v26 = vmin.u32 %v1730_v14, %v3762_v18  ;;  %v1811_v46 = vsel %vm1801_vm10, %v1808_v31, %v1810_v27  ;;  %v1554_v21 = vsel %vm1552_vm4, %v2452_v1, %v1553_v10 }
 0x4e6   : > { %v1653_v53 = vadd.s32 3, %v1649_v19  ;;  %v3793_v38 = vmul.u32.u64.low %v1816_v40, %v1815_v63  ;;  %v3794_v13 = vmul.u32.u64.high %v1816_v40, %v1815_v63, %v3793_v38  ;;  %v1558_v47 = vsel %vm1551_vm5, %v1554_v21, %v1557_v7 }
 0x4e7   : > { %v1732_v34 = vclz %v2309_v26  ;;  %v1804_v44 = vsel %vm1800_vm9, %v1784_v24, %v1787_v6  ;;  %v1806_v36 = vsel %vm1802_vm12, %v1790_v42, %v1805_v37  ;;  %v1988_v17 = vmul.f32 %v3530_v52, %v3580_v43 }
 0x4e8   : > { %v1559_v8 = vsel %vm1548_vm6, nan, %v1558_v47  ;;  %v3806_v19 = vmul.u32.u64.low %v1816_v40, %v1811_v46  ;;  %v3807_v48 = vmul.u32.u64.high %v1816_v40, %v1811_v46, %v3806_v19  ;;  %v3814_v56 = vsel %vm1239_vm8, %v3602_v23, %v3596_v3 }
 0x4e9   : > { %v1334_v6 = vsub.s32 4, %v3260_v57  ;;  %v3819_v42 = vmul.f32 %v3530_v52, %v3586_v62  ;;  %v2310_v43 = vadd.s32 4294967294, %v1732_v34  ;;  %v3825_v25 = vsel %vm3758_vm11, %v3034_v41, %v3607_v16 }
 0x4ea   : > { %v1807_v24 = vsel %vm1801_vm10, %v1804_v44, %v1806_v36  ;;  %v1993_v5 = vmul.f32 %v3740_v15, %v1559_v8  ;;  %v905_v3 = vadd.f32 %v3277_v32, %v3378_v58  ;;  %v3834_v23 = vadd.s32 4294967294, %v1420_v11 }
 0x4eb   : > { %v1654_v62 = vand.u32 3, %v1653_v53  ;;  %vm2311_vm14 = vcmp.lt.s32.totalorder %v2310_v43, 0  ;;  %vm1825_vm15 = vc.u32 %v3794_v13, %v3806_v19  ;;  %v1826_v16 = vadd.s32 1, %v3807_v48 }
 0x4ec   : > { %v1735_v1 = vsel %vm2311_vm14, 0, %v2310_v43  ;;  %v1998_v28 = vadd.f32 %v1993_v5, %v1988_v17  ;;  %v915_v54 = vfloor.f32 %v905_v3  ;;  %v1720_v31 = vadd.s32 %v3680_v60, %v3678_v12 }
 0x4ed   : > { %v1736_v27 = vsub.s32 32, %v1735_v1  ;;  %v1740_v9 = vsub.s32 4294967266, %v1735_v1  ;;  %v1823_v32 = vmul.u32 %v1816_v40, %v1807_v24  ;;  %v1750_v58 = vsub.s32 4, %v3738_v39 }
 0x4ee   : > { %v1827_v11 = vsel %vm1825_vm15, %v1826_v16, %v3807_v48  ;;  %v1999_v35 = vrot.slane %v1998_v28, 4  ;;  %v925_v20 = vsub.f32 %v905_v3, %v915_v54  ;;  %v1737_v29 = vshll.u32 %v3762_v18, %v1735_v1 }
 0x4ef   : > { %v1738_v45 = vshrl.u32 %v1720_v31, %v1736_v27  ;;  %v1741_v14 = vadd.s32 127, %v1740_v9  ;;  %v1828_v37 = vadd.s32 %v1827_v11, %v1823_v32  ;;  %vm1236_vm13 = vweird.f32 %v3025_v30  ;;  %v4205_v9 = vld [vmem:[#allocation11_spill] sm:$0xff] }
 0x4f0   : > { %vm2299_vm1 = vcmp.lt.s32.totalorder %v3834_v23, 0  ;;  %vm1652_vm3 = vweird.f32 %v3384_v59  ;;  %vm1666_vm4 = vcmp.lt.s32.totalorder %v3433_v22, 0  ;;  %v2000_v12 = vadd.f32 %v1999_v35, %v1998_v28  ;;  %2149 = vrot.lane.b32.xlu0 %v925_v20, %s2569_s13 }
 0x4f1   : > { %v3849_v60 = vmul.f32 6.2831855, %v925_v20  ;;  %v2456_v10 = vpop.eup %2455  ;;  %vm1655_vm5 = vcmp.lt.s32.totalorder %v1654_v62, 2  ;;  %v1739_v63 = vor.u32 %v1738_v45, %v1737_v29  ;;  %v1742_v18 = vshll.u32 %v1741_v14, 23 }
 0x4f2   : > { %v1829_v40 = vadd.s32 536870912, %v1828_v37  ;;  %v2458_v7 = vpop.eup %2457  ;;  %vm1656_vm6 = vcmp.eq.s32.totalorder %v1654_v62, 0  ;;  %vm1659_vm7 = vcmp.eq.s32.totalorder %v1654_v62, 2  ;;  %v1660_v26 = vxor.u32 2147483648, %v2456_v10  ;;  %v4206_v62 = vld [vmem:[#allocation8_spill] sm:$0xff] }
 0x4f3   : > { %v2001_v46 = vrot.slane %v2000_v12, 2  ;;  %v1657_v21 = vxor.u32 2147483648, %v2458_v7  ;;  %v1743_v53 = vor.u32 4788187, %v1742_v18  ;;  %v1751_v38 = vsel %vm1666_vm4, %v1750_v58, %v3738_v39 }
 0x4f4   : > { %v3854_v47 = vshrl.u32 %v1829_v40, 30  ;;  %v1661_v34 = vsel %vm1659_vm7, %v1660_v26, %v2458_v7  ;;  %v1872_v36 = vand.u32 2147483647, %v3849_v60  ;;  %v1875_v17 = vand.u32 2139095040, %v3849_v60 }
 0x4f5   : > { %v2002_v44 = vadd.f32 %v2001_v46, %v2000_v12  ;;  %v1658_v8 = vsel %vm1656_vm6, %v2456_v10, %v1657_v21  ;;  %v1744_v48 = vand.u32 2147483647, %v1743_v53  ;;  %v1746_v43 = vcvt.s32.f32 %v1739_v63  ;;  %v4207_v53 = vld [vmem:[#allocation17_spill] sm:$0xff] }
 0x4f6   : > { %v1831_v24 = vshll.u32 %v3854_v47, 30  ;;  %v1662_v5 = vsel %vm1655_vm5, %v1658_v8, %v1661_v34  ;;  %v4202_v3 = vand.u32 2147483647, %v3433_v22  ;;  %v1876_v16 = vshrl.u32 %v1875_v17, 23 }
 0x4f7   : > { %v2003_v39 = vrot.slane %v2002_v44, 1  ;;  %v1663_v28 = vsel %vm1652_vm3, nan, %v1662_v5  ;;  %v1747_v54 = vmul.f32 %v1746_v43, %v1744_v48  ;;  %v2048_v32 = vrot.slane %v4206_v62, %v4205_v9 }
 0x4f8   : > { %vm3862_vm8 = vcmp.le.f32.partialorder %v4202_v3, 0.7853982  ;;  %v3870_v27 = vsub.s32 %v1828_v37, %v1831_v24  ;;  %v1994_v58 = vmul.f32 %v3740_v15, %v1663_v28  ;;  %v2316_v35 = vadd.s32 4294967169, %v1876_v16 }
 0x4f9   : > { %v1753_v31 = vsel %vm3862_vm8, 0, %v1751_v38  ;;  %v2004_v11 = vadd.f32 %v2003_v39, %v2002_v44  ;;  %v1247_v20 = vsel %vm1236_vm13, nan, %v3814_v56  ;;  %v1748_v29 = vxor.u32 2147483648, %v1747_v54 }
 0x4fa   : > { %v1834_v59 = vsub.s32 0, %v3870_v27  ;;  %v1879_v45 = vand.u32 8388607, %v1872_v36  ;;  %2459 = vcosq.f32 %v3825_v25  ;;  %v2005_v14 = vadd.f32 %v1994_v58, %v3819_v42 }
 0x4fb   : > { %v2033_v37 = vmul.f32 0.1, %v2004_v11  ;;  %v1882_v12 = vadd.s32 1, %v2316_v35  ;;  %v3886_v10 = vsel %vm2299_vm1, 0, %v3834_v23  ;;  %v1749_v30 = vsel %vm1666_vm4, %v1748_v29, %v1747_v54 }
 0x4fc   : > { %v1757_v56 = vadd.s32 3, %v1753_v31  ;;  %v2313_v63 = vmin.u32 %v1834_v59, %v3870_v27  ;;  %v1752_v18 = vsel %vm3862_vm8, %v3433_v22, %v1749_v30  ;;  %v2006_v40 = vrot.slane %v2005_v14, 4 }
 0x4fd   : > { %v2070_v7 = vadd.f32 %v2048_v32, %v2033_v37  ;;  %vm1883_vm9 = vcmp.gt.s32.totalorder %v1882_v12, 0  ;;  %v3899_v42 = vsel %vm1250_vm2, %v1334_v6, %v3260_v57  ;;  %2461 = vcosq.f32 %v1752_v18 }
 0x4fe   : > { %v1836_v23 = vclz %v2313_v63  ;;  %v1880_v26 = vor.u32 8388608, %v1879_v45  ;;  %v3902_v46 = vmul.f32 %v3530_v52, %v1247_v20  ;;  %2463 = vsinq.f32 %v1752_v18 }
 0x4ff   : > { %v2007_v21 = vadd.f32 %v2006_v40, %v2005_v14  ;;  %v2085_v38 = vadd.f32 %v4207_v53, %v2070_v7  ;;  %2465 = vsinq.f32 %v3825_v25  ;;  %v1428_v34 = vsub.s32 4294967266, %v3886_v10 }
 0x500   : > { %v2314_v44 = vadd.s32 4294967294, %v1836_v23  ;;  %v1884_v17 = vsel %vm1883_vm9, %v1882_v12, 0  ;;  %v3907_v8 = vand.u32 3, %v1757_v56  ;;  %v1824_v57 = vadd.s32 %v3806_v19, %v3794_v13  ;;  %v4208_v23 = vld [vmem:[#allocation10_spill] sm:$0xff] }
 0x501   : > { %v2008_v6 = vrot.slane %v2007_v21, 2  ;;  %v1886_v48 = vand.u32 31, %v1884_v17  ;;  %v1854_v43 = vsub.s32 4, %v3854_v47  ;;  %2467 = vtanh.f32 %v2085_v38 }
 0x502   : > { %vm2315_vm2 = vcmp.lt.s32.totalorder %v2314_v44, 0  ;;  %v3912_v24 = vshll.u32 %v1880_v26, 8  ;;  %v3914_v25 = vshrl.u32 %v1884_v17, 5  ;;  %vm1763_vm10 = vcmp.eq.s32.totalorder %v3907_v8, 2 }
 0x503   : > { %v1839_v5 = vsel %vm2315_vm2, 0, %v2314_v44  ;;  %v2009_v3 = vadd.f32 %v2008_v6, %v2007_v21  ;;  %v1887_v1 = vsub.s32 32, %v1886_v48  ;;  %v1889_v54 = vshll.u32 %v4186_v61, %v1886_v48 }
 0x504   : > { %v1840_v39 = vsub.s32 32, %v1839_v5  ;;  %v1841_v16 = vshll.u32 %v3870_v27, %v1839_v5  ;;  %v1844_v28 = vsub.s32 4294967266, %v1839_v5  ;;  %v1892_v31 = vshll.u32 %v4189_v50, %v1886_v48 }
 0x505   : > { %v2010_v13 = vrot.slane %v2009_v3, 1  ;;  %v1890_v19 = vshrl.u32 %v4189_v50, %v1887_v1  ;;  %v1893_v32 = vshrl.u32 %v4190_v49, %v1887_v1  ;;  %vm1760_vm12 = vcmp.eq.s32.totalorder %v3907_v8, 0 }
 0x506   : > { %v1842_v58 = vshrl.u32 %v1824_v57, %v1840_v39  ;;  %v1845_v11 = vadd.s32 127, %v1844_v28  ;;  %v1895_v35 = vshll.u32 %v4190_v49, %v1886_v48  ;;  %v1896_v27 = vshrl.u32 %v4179_v51, %v1887_v1 }
 0x507   : > { %vm1759_vm14 = vcmp.lt.s32.totalorder %v3907_v8, 2  ;;  %v2011_v20 = vadd.f32 %v2010_v13, %v2009_v3  ;;  %v1888_v29 = vshrl.u32 %v4186_v61, %v1887_v1  ;;  %v1891_v59 = vor.u32 %v1890_v19, %v1889_v54  ;;  %v3928_v14 = vpop.eup %2459 }
 0x508   : > { %v1898_v45 = vshll.u32 %v4179_v51, %v1886_v48  ;;  %vm1756_vm15 = vweird.f32 %v3433_v22  ;;  %v1843_v50 = vor.u32 %v1842_v58, %v1841_v16  ;;  %v1846_v37 = vshll.u32 %v1845_v11, 23 }
 0x509   : > { %v1897_v12 = vor.u32 %v1896_v27, %v1895_v35  ;;  %v1899_v30 = vshrl.u32 %v4187_v55, %v1887_v1  ;;  %vm1770_vm13 = vcmp.lt.s32.totalorder %v3462_v4, 0  ;;  %v2034_v49 = vmul.f32 0.1, %v2011_v20 }
 0x50a   : > { %v1894_v56 = vor.u32 %v1893_v32, %v1892_v31  ;;  %v1901_v63 = vshll.u32 %v4187_v55, %v1886_v48  ;;  %v1902_v61 = vshrl.u32 %v4180_v2, %v1887_v1  ;;  %v1847_v18 = vor.u32 4788187, %v1846_v37  ;;  %v2462_v7 = vpop.eup %2461 }
 0x50b   : > { %v1850_v40 = vcvt.s32.f32 %v1843_v50  ;;  %v1900_v51 = vor.u32 %v1899_v30, %v1898_v45  ;;  %vm1904_vm1 = vcmp.lt.s32.totalorder %v3914_v25, 1  ;;  %v2071_v26 = vadd.f32 %v4208_v23, %v2034_v49  ;;  %v2464_v38 = vpop.eup %2463 }
 0x50c   : > { %v1903_v21 = vor.u32 %v1902_v61, %v1901_v63  ;;  %vm1905_vm3 = vcmp.lt.s32.totalorder %v3914_v25, 2  ;;  %vm1907_vm4 = vcmp.lt.s32.totalorder %v3914_v25, 4  ;;  %v1764_v44 = vxor.u32 2147483648, %v2462_v7  ;;  %v3942_v55 = vpop.eup %2465 }
 0x50d   : > { %v1848_v17 = vand.u32 2147483647, %v1847_v18  ;;  %vm1906_vm5 = vcmp.lt.s32.totalorder %v3914_v25, 3  ;;  %v1909_v2 = vsel %vm1907_vm4, %v1897_v12, 2102212464  ;;  %v1761_v57 = vxor.u32 2147483648, %v2464_v38 }
 0x50e   : > { %v2086_v6 = vadd.f32 %v4207_v53, %v2071_v26  ;;  %v1908_v48 = vsel %vm1904_vm1, %v1888_v29, %v1891_v59  ;;  %v1912_v5 = vsel %vm1904_vm1, %v1891_v59, %v1894_v56  ;;  %v1765_v3 = vsel %vm1763_vm10, %v1764_v44, %v2464_v38  ;;  %v3955_v28 = vpop.eup %2467 }
 0x50f   : > { %v1851_v1 = vmul.f32 %v1850_v40, %v1848_v17  ;;  %v1910_v39 = vsel %vm1906_vm5, %v1894_v56, %v1909_v2  ;;  %v1913_v16 = vsel %vm1907_vm4, %v1900_v51, 920167782  ;;  %v1762_v54 = vsel %vm1760_vm12, %v2462_v7, %v1761_v57  ;;  %v4212_v7 = vld [vmem:[#allocation13_spill] sm:$0xff] }
 0x510   : > { %2469 = vtanh.f32 %v2086_v6  ;;  %v1914_v13 = vsel %vm1906_vm5, %v1897_v12, %v1913_v16  ;;  %v1916_v19 = vsel %vm1904_vm1, %v1894_v56, %v1897_v12  ;;  %v1766_v31 = vsel %vm1759_vm14, %v1762_v54, %v1765_v3 }
 0x511   : > { %v1852_v32 = vxor.u32 2147483648, %v1851_v1  ;;  %v1915_v58 = vsel %vm1905_vm3, %v1912_v5, %v1914_v13  ;;  %v1917_v11 = vsel %vm1907_vm4, %v1903_v21, 1326507024  ;;  %v1767_v35 = vsel %vm1756_vm15, nan, %v1766_v31 }
 0x512   : > { %v1918_v27 = vsel %vm1906_vm5, %v1900_v51, %v1917_v11  ;;  %v3974_v20 = vmul.u32.u64.low %v3912_v24, %v1915_v58  ;;  %v3975_v29 = vmul.u32.u64.high %v3912_v24, %v1915_v58, %v3974_v20  ;;  %vm3980_vm6 = vcmp.le.f32.partialorder %v1768_v0, 0.7853982  ;;  %v4211_v51 = vld [vmem:[#allocation14_spill] sm:$0xff] }
 0x513   : > { %v1853_v59 = vsel %vm1770_vm13, %v1852_v32, %v1851_v1  ;;  %v1995_v22 = vmul.f32 %v3740_v15, %v1767_v35  ;;  %v1919_v45 = vsel %vm1905_vm3, %v1916_v19, %v1918_v27  ;;  %v1337_v50 = vsel %vm3758_vm11, 0, %v3899_v42 }
 0x514   : > { %v1856_v37 = vsel %vm3980_vm6, %v3462_v4, %v1853_v59  ;;  %v3996_v0 = vmul.u32.u64.low %v3912_v24, %v1919_v45  ;;  %v3997_v12 = vmul.u32.u64.high %v3912_v24, %v1919_v45, %v3996_v0  ;;  %v1911_v49 = vsel %vm1905_vm3, %v1908_v48, %v1910_v39  ;;  %v4213_v48 = vld [vmem:[#allocation16_spill] sm:$0xff] }
 0x515   : > { %2471 = vcosq.f32 %v1856_v37  ;;  %v2012_v30 = vadd.f32 %v1995_v22, %v3902_v46  ;;  %v1855_v33 = vsel %vm1770_vm13, %v1854_v43, %v3854_v47  ;;  %v1930_v42 = vadd.s32 1, %v3975_v29 }
 0x516   : > { %2473 = vsinq.f32 %v1856_v37  ;;  %v1341_v56 = vadd.s32 3, %v1337_v50  ;;  %v1429_v63 = vadd.s32 127, %v1428_v34  ;;  %v1927_v61 = vmul.u32 %v3912_v24, %v1911_v49 }
 0x517   : > { %vm1929_vm11 = vc.u32 %v3997_v12, %v3974_v20  ;;  %v1424_v46 = vsub.s32 32, %v3886_v10  ;;  %v1857_v25 = vsel %vm3980_vm6, 0, %v1855_v33  ;;  %v2013_v18 = vrot.slane %v2012_v30, 4 }
 0x518   : > { %v1931_v47 = vsel %vm1929_vm11, %v1930_v42, %v3975_v29  ;;  %v1342_v40 = vand.u32 3, %v1341_v56  ;;  %v1408_v23 = vadd.s32 %v4212_v7, %v4211_v51  ;;  %v1430_v26 = vshll.u32 %v1429_v63, 23 }
 0x519   : > { %v1932_v43 = vadd.s32 %v1931_v47, %v1927_v61  ;;  %v1345_v34 = vxor.u32 2147483648, %v3942_v55  ;;  %v1348_v24 = vxor.u32 2147483648, %v3928_v14  ;;  %v1861_v21 = vadd.s32 3, %v1857_v25 }
 0x51a   : > { %v1426_v17 = vshrl.u32 %v1408_v23, %v1424_v46  ;;  %v2014_v2 = vadd.f32 %v2013_v18, %v2012_v30  ;;  %vm1344_vm7 = vcmp.eq.s32.totalorder %v1342_v40, 0  ;;  %vm1347_vm8 = vcmp.eq.s32.totalorder %v1342_v40, 2  ;;  %v4214_v18 = vld [vmem:[#allocation12_spill] sm:$0xff] }
 0x51b   : > { %v1933_v38 = vadd.s32 536870912, %v1932_v43  ;;  %v1425_v5 = vshll.u32 %v4213_v48, %v3886_v10  ;;  %v1431_v3 = vor.u32 4788187, %v1430_v26  ;;  %v1346_v1 = vsel %vm1344_vm7, %v3928_v14, %v1345_v34 }
 0x51c   : > { %v1349_v39 = vsel %vm1347_vm8, %v1348_v24, %v3942_v55  ;;  %v1862_v16 = vand.u32 3, %v1861_v21  ;;  %v2015_v19 = vrot.slane %v2014_v2, 2  ;;  %vm1343_vm9 = vcmp.lt.s32.totalorder %v1342_v40, 2 }
 0x51d   : > { %v4021_v44 = vpop.eup %2469  ;;  %v4023_v57 = vshrl.u32 %v1933_v38, 30  ;;  %v1427_v13 = vor.u32 %v1426_v17, %v1425_v5  ;;  %v1350_v11 = vsel %vm1343_vm9, %v1346_v1, %v1349_v39  ;;  %v1432_v35 = vand.u32 2147483647, %v1431_v3  ;;  %v4219_v39 = vld [vmem:[#allocation9_spill] sm:$0xff] }
 0x51e   : > { %v2100_v6 = vcombine.low %v3955_v28, %v4021_v44  ;;  %vm1340_vm2 = vweird.f32 %v3034_v41  ;;  %vm1867_vm10 = vcmp.eq.s32.totalorder %v1862_v16, 2  ;;  %vm1864_vm12 = vcmp.eq.s32.totalorder %v1862_v16, 0 }
 0x51f   : > { %v1935_v54 = vshll.u32 %v4023_v57, 30  ;;  %v1434_v14 = vcvt.s32.f32 %v1427_v13  ;;  %v2016_v8 = vadd.f32 %v2015_v19, %v2014_v2  ;;  %v1351_v59 = vsel %vm1340_vm2, nan, %v1350_v11  ;;  %v4218_v2 = vld [vmem:[#allocation7_spill] sm:$0xff] }
 0x520   : > { %vm1863_vm14 = vcmp.lt.s32.totalorder %v1862_v16, 2  ;;  %vm1860_vm15 = vweird.f32 %v3462_v4  ;;  %v1991_v49 = vmul.f32 %v3530_v52, %v1351_v59  ;;  %vm1354_vm1 = vcmp.lt.s32.totalorder %v4214_v18, 0  ;;  %v4220_v19 = vld [vmem:[#allocation15_spill] sm:$0xff] }
 0x521   : > { %v1936_v32 = vsub.s32 %v1932_v43, %v1935_v54  ;;  %v1435_v50 = vmul.f32 %v1434_v14, %v1432_v35  ;;  %v2017_v33 = vrot.slane %v2016_v8, 1  ;;  %v1928_v4 = vadd.s32 %v3974_v20, %v3997_v12 }
 0x522   : > { %v2472_v31 = vpop.eup %2471  ;;  %v4215_v34 = vand.u32 2147483647, %v4214_v18  ;;  %v2059_v48 = vsub.s32 6, %v4218_v2  ;;  %vm1874_vm4 = vcmp.lt.s32.totalorder %v3849_v60, 0  ;;  %vm4062_vm5 = vcmp.le.f32.partialorder %v1872_v36, 0.7853982 }
 0x523   : > { %v2474_v58 = vpop.eup %2473  ;;  %v1868_v27 = vxor.u32 2147483648, %v2472_v31  ;;  %v1938_v29 = vsub.s32 0, %v1936_v32  ;;  %v1436_v56 = vxor.u32 2147483648, %v1435_v50  ;;  %v2018_v61 = vadd.f32 %v2017_v33, %v2016_v8 }
 0x524   : > { %v1865_v10 = vxor.u32 2147483648, %v2474_v58  ;;  %vm4043_vm3 = vcmp.le.f32.partialorder %v4215_v34, 0.7853982  ;;  %vm1444_vm9 = vweird.f32 %v4214_v18 }
 0x525   : > { %v1869_v55 = vsel %vm1867_vm10, %v1868_v27, %v2474_v58  ;;  %v2317_v45 = vmin.u32 %v1938_v29, %v1936_v32  ;;  %v1437_v40 = vsel %vm1354_vm1, %v1436_v56, %v1435_v50  ;;  %v2035_v38 = vmul.f32 0.1, %v2018_v61 }
 0x526   : > { %v1866_v22 = vsel %vm1864_vm12, %v2472_v31, %v1865_v10  ;;  %v1440_v20 = vsel %vm4043_vm3, %v4214_v18, %v1437_v40  ;;  %v1438_v31 = vsub.s32 4, %v4220_v19  ;;  %vm1964_vm12 = vweird.f32 %v3849_v60 }
 0x527   : > { %v1870_v37 = vsel %vm1863_vm14, %v1866_v22, %v1869_v55  ;;  %v1940_v30 = vclz %v2317_v45  ;;  %2475 = vcosq.f32 %v1440_v20  ;;  %v2072_v16 = vadd.f32 %v4219_v39, %v2035_v38 }
 0x528   : > { %v1871_v0 = vsel %vm1860_vm15, nan, %v1870_v37  ;;  %2477 = vsinq.f32 %v1440_v20  ;;  %v1439_v29 = vsel %vm1354_vm1, %v1438_v31, %v4220_v19  ;;  %v1958_v55 = vsub.s32 4, %v4023_v57 }
 0x529   : > { %v1996_v41 = vmul.f32 %v3740_v15, %v1871_v0  ;;  %v2318_v42 = vadd.s32 4294967294, %v1940_v30  ;;  %v2087_v27 = vadd.f32 %v4207_v53, %v2072_v16  ;;  %v1441_v45 = vsel %vm4043_vm3, 0, %v1439_v29 }
 0x52a   : > { %v1959_v50 = vsel %vm1874_vm4, %v1958_v55, %v4023_v57  ;;  %v1445_v36 = vadd.s32 3, %v1441_v45 }
 0x52b   : > { %v2019_v63 = vadd.f32 %v1996_v41, %v1991_v49  ;;  %vm2319_vm13 = vcmp.lt.s32.totalorder %v2318_v42, 0  ;;  %2479 = vtanh.f32 %v2087_v27  ;;  %v1961_v0 = vsel %vm4062_vm5, 0, %v1959_v50 }
 0x52c   : > { %v1943_v25 = vsel %vm2319_vm13, 0, %v2318_v42  ;;  %v2582_v49 = vmov 1966171168   ;;  %v1446_v33 = vand.u32 3, %v1445_v36  ;;  %v1965_v42 = vadd.s32 3, %v1961_v0 }
 0x52d   : > { %v2020_v46 = vrot.slane %v2019_v63, 4  ;;  %v1944_v47 = vsub.s32 32, %v1943_v25  ;;  %v1948_v43 = vsub.s32 4294967266, %v1943_v25  ;;  %v1945_v7 = vshll.u32 %v1936_v32, %v1943_v25 }
 0x52e   : > { %v2060_v32 = vrot.slane %v4206_v62, %v2059_v48  ;;  %v2103_v41 = vunpack.c.l.s4 %v2582_v49  ;;  %vm1448_vm6 = vcmp.eq.s32.totalorder %v1446_v33, 0  ;;  %vm1451_vm11 = vcmp.eq.s32.totalorder %v1446_v33, 2 }
 0x52f   : > { %v2021_v51 = vadd.f32 %v2020_v46, %v2019_v63  ;;  %v1946_v23 = vshrl.u32 %v1928_v4, %v1944_v47  ;;  %v1949_v26 = vadd.s32 127, %v1948_v43  ;;  %v1966_v46 = vand.u32 3, %v1965_v42 }
 0x530   : > { %v2104_v61 = vunpack.c.0.s8 %v2103_v41  ;;  %vm1447_vm7 = vcmp.lt.s32.totalorder %v1446_v33, 2 }
 0x531   : > { %v2022_v21 = vrot.slane %v2021_v51, 2  ;;  %v1947_v12 = vor.u32 %v1946_v23, %v1945_v7  ;;  %v1950_v17 = vshll.u32 %v1949_v26, 23  ;;  %vm1971_vm8 = vcmp.eq.s32.totalorder %v1966_v46, 2 }
 0x532   : > { %v2107_v43 = vsub.s32 %v2104_v61, %v4218_v2  ;;  %vm1968_vm2 = vcmp.eq.s32.totalorder %v1966_v46, 0  ;;  %vm1967_vm10 = vcmp.lt.s32.totalorder %v1966_v46, 2 }
 0x533   : > { %v2023_v5 = vadd.f32 %v2022_v21, %v2021_v51  ;;  %v1951_v3 = vor.u32 4788187, %v1950_v17  ;;  %v1954_v13 = vcvt.s32.f32 %v1947_v12 }
 0x534   : > { %v2476_v37 = vpop.eup %2475  ;;  %v2108_v34 = vrot.slane %v2100_v6, %v2107_v43 }
 0x535   : > { %v2024_v1 = vrot.slane %v2023_v5, 1  ;;  %v1952_v54 = vand.u32 2147483647, %v1951_v3  ;;  %v2478_v30 = vpop.eup %2477  ;;  %v1452_v63 = vxor.u32 2147483648, %v2476_v37  ;;  %v2489_v3 = vld [vmem:[%s2691_s29] sm:$0x1f] }
 0x536   : > { %v1449_v56 = vxor.u32 2147483648, %v2478_v30  ;;  %s2324_s29 = smul.u32 5, %s306_s7 }
 0x537   : > { %v2025_v58 = vadd.f32 %v2024_v1, %v2023_v5  ;;  %v1955_v11 = vmul.f32 %v1954_v13, %v1952_v54  ;;  %v1453_v57 = vsel %vm1451_vm11, %v1452_v63, %v2478_v30  ;;  %v2040_v1 = vunpack.c.h.bf16 %v2489_v3 }
 0x538   : > { %v2480_v25 = vpop.eup %2479  ;;  %v1450_v4 = vsel %vm1448_vm6, %v2476_v37, %v1449_v56  ;;  %s308_s12 = scalar_lea.vmem [#allocation4], %s2324_s29 }
 0x539   : > { %v2036_v35 = vmul.f32 0.1, %v2025_v58  ;;  %v1956_v10 = vxor.u32 2147483648, %v1955_v11  ;;  %v1454_v23 = vsel %vm1447_vm7, %v1450_v4, %v1453_v57  ;;  %v2042_v16 = vmul.f32 0.003, %v2040_v1  ;;  %s2173_s13 = sshll.u32 %s308_s12, 4  ;;  %s2174_s13 = int_to_ptr.vmem [resolvable:$true] %s2173_s13 }
 0x53a   : > { %v1455_v20 = vsel %vm1444_vm9, nan, %v1454_v23  ;;  %s2490_s18 = scalar_lea.vmem %s2174_s13, 80  ;;  %p2497_p1 = scmp.lt.s32.totalorder %s2174_s13, %s2495_s26 }
 0x53b   : > { %v2073_v14 = vadd.f32 %v2060_v32, %v2036_v35  ;;  %v1957_v62 = vsel %vm1874_vm4, %v1956_v10, %v1955_v11  ;;  %v1992_v5 = vmul.f32 %v3530_v52, %v1455_v20  ;;  %p2491_p12 = scmp.ne.s32.totalorder %s2174_s13, %s2490_s18  ;;  %p2498_p2 = scmp.lt.s32.totalorder %s2496_s20, %s2490_s18 }
 0x53c   : > { %v1960_v22 = vsel %vm4062_vm5, %v3849_v60, %v1957_v62  ;;  %v2064_v60 = vrot.slane %v2042_v16, %v4205_v9  ;;  %v4223_v9 = vlaneseq }
 0x53d   : > { %v2088_v59 = vadd.f32 %v4207_v53, %v2073_v14  ;;  %2481 = vcosq.f32 %v1960_v22  ;;  %p2492_p13 = pnand %p2491_p12, %p2662_p4  ;;  %p2499_p3 = por %p2498_p2, %p2497_p1 }
 0x53e   : > { %vm2142_vm14 = vcmp.lt.s32.totalorder %v4223_v9, 640 }
 0x53f   : > { %2483 = vtanh.f32 %v2088_v59  ;;  %p2493_p0 = pneg %p2492_p13 }
 0x540   : > { %2485 = vsinq.f32 %v1960_v22 }
 0x541   : > { %p2500_p5 = pnand %p2499_p3, %p2493_p0 }
 0x54a   : > { %v2482_v47 = vpop.eup %2481 }
 0x54b   : > { %v1972_v51 = vxor.u32 2147483648, %v2482_v47 }
 0x54c   : > { %v2484_v40 = vpop.eup %2483 }
 0x54d   : > { %v2486_v7 = vpop.eup %2485  ;;  %v2101_v26 = vcombine.low %v2480_v25, %v2484_v40 }
 0x54e   : > { %v1969_v24 = vxor.u32 2147483648, %v2486_v7  ;;  %v1973_v21 = vsel %vm1971_vm8, %v1972_v51, %v2486_v7 }
 0x54f   : > { %v2115_v38 = vrot.slane %v2101_v26, %v2107_v43 }
 0x550   : > { %v1970_v12 = vsel %vm1968_vm2, %v2482_v47, %v1969_v24 }
 0x551   : > { %v1974_v17 = vsel %vm1967_vm10, %v1970_v12, %v1973_v21  ;;  %v2123_v2 = vcombine.low %v2108_v34, %v2115_v38 }
 0x552   : > { %v1975_v48 = vsel %vm1964_vm12, nan, %v1974_v17 }
 0x553   : > { %v1997_v28 = vmul.f32 %v3740_v15, %v1975_v48  ;;  %v2130_v35 = vrot.slane %v2123_v2, %v2107_v43 }
 0x555   : > { %v2026_v44 = vadd.f32 %v1997_v28, %v1992_v5 }
 0x557   : > { %v2027_v6 = vrot.slane %v2026_v44, 4 }
 0x559   : > { %v2028_v18 = vadd.f32 %v2027_v6, %v2026_v44 }
 0x55b   : > { %v2029_v39 = vrot.slane %v2028_v18, 2 }
 0x55d   : > { %v2030_v54 = vadd.f32 %v2029_v39, %v2028_v18 }
 0x55f   : > { %v2031_v13 = vrot.slane %v2030_v54, 1 }
 0x561   : > { %v2032_v19 = vadd.f32 %v2031_v13, %v2030_v54 }
 0x562   : > { %v2150_v32 = vpop.permute.xlu0 %2149 }
 0x563   : > { %v2037_v31 = vmul.f32 0.1, %v2032_v19  ;;  %2155 = vst.msk [vmem:[#allocation2 + $0x8] sm:$0xff] %vm339_vm0, %v2150_v32 }
 0x565   : > { %v2074_v52 = vadd.f32 %v2064_v60, %v2037_v31 }
 0x567   : > { %v2089_v15 = vadd.f32 %v4207_v53, %v2074_v52 }
 0x569   : > { %2487 = vtanh.f32 %v2089_v15 }
 0x576   : > { %v2488_v58 = vpop.eup %2487 }
 0x577   : > { %v2122_v11 = vrot.slane %v2488_v58, %v2107_v43 }
 0x579   : > { %v2137_v27 = vrot.slane %v2122_v11, %v2107_v43 }
 0x57b   : > { %v2138_v10 = vcombine.low %v2130_v35, %v2137_v27 }
 0x57d   : > { %2144 = vst.msk [vmem:[%s308_s12] sm:$0x1f] %vm2142_vm14, %v2138_v10 }
 0x57e   : > { %2503 = shalt.err (!%p2500_p5)
}
 0x57f   : > { %s2504_s21 = scalar_lea.hbm %s2171_s16, 80  ;;  %s2508_s7 = scalar_lea.hbm %s4133_s6, 160 }
 0x580   : > { %p2505_p6 = scmp.ne.s32.totalorder %s2171_s16, %s2504_s21  ;;  %p2509_p10 = scmp.lt.s32.totalorder %s2171_s16, %s4133_s6 }
 0x581   : > { %p2510_p11 = scmp.lt.s32.totalorder %s2508_s7, %s2504_s21 }
 0x582   : > { %p2506_p7 = pnand %p2505_p6, %p2662_p4 }
 0x583   : > { %p2511_p12 = por %p2510_p11, %p2509_p10 }
 0x584   : > { %p2507_p9 = pneg %p2506_p7 }
 0x586   : > { %p2512_p13 = pnand %p2511_p12, %p2507_p9 }
 0x588   : > { %2515 = shalt.err (!%p2512_p13)
}
 0x589   : > { %2367 = dma.vmem_to_hbm [thread:$0]  (%p2662_p4), %s2174_s13, 80, %s2171_s16, %s2157_s17  }
 0x58a PF: > { %p2373_p0 = scmp.ge.s32.totalorder %s2566_s28, 2  ;;  %s2185_s12 = sand.u32 1, %s2546_s23  }
 0x58b   : > { %s2186_s14 = scalar_lea.sflag [#allocation5], %s2185_s12 }
 0x58c   : > { %p2370_p1 = pnand %p2373_p0, %p2669_p8 }
 0x58e   : > { %p2371_p2 = pneg %p2370_p1 }
 0x590   : > { %2541 = dma.done.wait (%p2371_p2), %s2186_s14, 80  }
 0x591   : > { %2543 = vsyncadd (%p2371_p2), %s2186_s14, 4294967216  ;;  %s21_s28 = sadd.s32 1, %s2566_s28   ;;  %s4224_s23 = smov %s2550_s24 }
 0x592   : > { %p18_p3 = scmp.ge.s32.totalorder %s21_s28, 4   ;;  %s4225_s24 = smov %s2554_s25 }
 0x593   : > { %s4226_s25 = smov %s2675_s11  ;;  %s4227_s26 = smov %s2562_s27 }
 0x594   : > { %s4228_s27 = smov %s4230_s30  ;;  %20 = sbr.rel (!%p18_p3) target bundleno = 7 (0x7), region = 89 }
 0x599   :  { %2191 = vsyncpa [#allocation5], 1 }
 0x59a   :  { %2193 = vsyncpa [#allocation5 + $0x1], 1 }

</bundles_post_ra>
